<compile_context>
chip_gen: v7x
topology: tpu7x:2x2x1
jax: 0.10.0
libtpu: 0.0.40
codegen_flags: <defaults>
</compile_context>

<pallas_src>
import functools
import math

import jax
import jax.numpy as jnp
from jax import lax
from jax.experimental import pallas as pl
from jax.experimental.pallas import tpu as pltpu

_EPS = 1e-5          # torch.nn.LayerNorm default
_NEG = -1e30         # finite mask value (avoids -inf - -inf hazards)


def _layernorm(x, g, b):
    mu = jnp.mean(x, axis=-1, keepdims=True)
    var = jnp.mean((x - mu) ** 2, axis=-1, keepdims=True)
    return (x - mu) * lax.rsqrt(var + _EPS) * g + b


# ------------------------------------------------------------------ kernel ---

def _fused_decoder_kernel(
    # per-batch activations
    tok_ref, pos_ref,
    # input norm
    ng_ref, nb_ref,
    # stacked per-layer weights (all VMEM-resident for the whole call)
    wqkv_ref, bqkv_ref, pw_ref, pb_ref,
    ln1g_ref, ln1b_ref,
    ff1w_ref, ff1b_ref, ff2w_ref, ff2b_ref,
    ln2g_ref, ln2b_ref,
    # final norm + LM head (vocab padded to 128 lanes)
    n2g_ref, n2b_ref, headw_ref, headb_ref,
    # output
    out_ref,
    *, n_heads, head_size, n_layers,
):
    # NOTE: grid is (B,) "parallel"; everything below is independent per batch
    # element, so there is no cross-grid-step state to protect.
    T = tok_ref.shape[1]
    H, hs = n_heads, head_size

    # Causal mask: built once per grid step, hoisted out of the layer loop.
    row = lax.broadcasted_iota(jnp.int32, (T, T), 0)
    col = lax.broadcasted_iota(jnp.int32, (T, T), 1)
    causal = col <= row                                     # tril == 1

    # Embedding add + input layernorm.
    x = tok_ref[0] + pos_ref[...]
    x = _layernorm(x, ng_ref[...], nb_ref[...])             # [T, E]

    def layer_body(l, x):
        # Fused QKV projection: one lane-dense [T,E]x[E,128] matmul + one vadd.
        # Q columns are pre-scaled by 1/sqrt(head_size) in prepare_params.
        qkv = (jnp.dot(x, wqkv_ref[l], preferred_element_type=jnp.float32)
               + bqkv_ref[l])                               # [T, 128]

        # Per-head attention (reference semantics: scores = K @ Q^T).
        outs = []
        for h in range(H):
            k = qkv[:, h * hs:(h + 1) * hs]
            q = qkv[:, (H + h) * hs:(H + h + 1) * hs]
            v = qkv[:, (2 * H + h) * hs:(2 * H + h + 1) * hs]
            s = lax.dot_general(k, q, (((1,), (1,)), ((), ())),
                                preferred_element_type=jnp.float32)   # [T, T]
            s = jnp.where(causal, s, _NEG)
            m = jnp.max(s, axis=-1, keepdims=True)
            e = jnp.exp(s - m)
            p = e * pl.reciprocal(jnp.sum(e, axis=-1, keepdims=True),
                                  approx=True)
            outs.append(jnp.dot(p, v, preferred_element_type=jnp.float32))
        o = jnp.concatenate(outs, axis=-1)                  # [T, H*hs]

        # Fused output projection (single matmul) + residual + norm1.
        y = (jnp.dot(o, pw_ref[l], preferred_element_type=jnp.float32)
             + pb_ref[l] + x)
        y = _layernorm(y, ln1g_ref[l], ln1b_ref[l])

        # Feed-forward (lane-dense 4E hidden) + residual + norm2.
        h1 = (jnp.dot(y, ff1w_ref[l], preferred_element_type=jnp.float32)
              + ff1b_ref[l])
        h1 = jnp.maximum(h1, 0.0)
        f = (jnp.dot(h1, ff2w_ref[l], preferred_element_type=jnp.float32)
             + ff2b_ref[l])
        return _layernorm(f + y, ln2g_ref[l], ln2b_ref[l])

    x = lax.fori_loop(0, n_layers, layer_body, x)

    # Final layernorm + LM head (lane-dense, padded to 128).
    g = _layernorm(x, n2g_ref[...], n2b_ref[...])
    out_ref[0] = (jnp.dot(g, headw_ref[...], preferred_element_type=jnp.float32)
                  + headb_ref[...])


# ----------------------------------------------------------------- wrapper ---

@functools.partial(jax.jit, static_argnames=("n_heads", "head_size", "vocab_size"))
def transformer_decoder_forward(kparams, tokens, *, n_heads, head_size, vocab_size):
    B, T = tokens.shape
    E = kparams["tok_emb"].shape[1]
    L = kparams["wqkv"].shape[0]
    qkvp = kparams["wqkv"].shape[2]
    ffh = kparams["ff1_w"].shape[2]
    v_pad = kparams["head_w"].shape[1]
    H, hs = n_heads, head_size

    # TODO(synk): embedding gather stays in XLA.
    tok = jnp.take(kparams["tok_emb"], tokens, axis=0)      # [B, T, E]
    pos = kparams["pos_emb"][:T]                            # [T, E]

    kernel = functools.partial(_fused_decoder_kernel,
                               n_heads=H, head_size=hs, n_layers=L)

    grid_spec = pltpu.PrefetchScalarGridSpec(
        num_scalar_prefetch=0,
        grid=(B,),
        in_specs=[
            pl.BlockSpec((1, T, E), lambda b: (b, 0, 0)),            # tok
            pl.BlockSpec((T, E), lambda b: (0, 0)),                  # pos
            pl.BlockSpec((1, E), lambda b: (0, 0)),                  # norm_g
            pl.BlockSpec((1, E), lambda b: (0, 0)),                  # norm_b
            pl.BlockSpec((L, E, qkvp), lambda b: (0, 0, 0)),         # wqkv (padded)
            pl.BlockSpec((L, 1, qkvp), lambda b: (0, 0, 0)),         # bqkv (padded)
            pl.BlockSpec((L, H * hs, E), lambda b: (0, 0, 0)),       # proj_w (fused)
            pl.BlockSpec((L, 1, E), lambda b: (0, 0, 0)),            # proj_b
            pl.BlockSpec((L, 1, E), lambda b: (0, 0, 0)),            # ln1_g
            pl.BlockSpec((L, 1, E), lambda b: (0, 0, 0)),            # ln1_b
            pl.BlockSpec((L, E, ffh), lambda b: (0, 0, 0)),          # ff1_w
            pl.BlockSpec((L, 1, ffh), lambda b: (0, 0, 0)),          # ff1_b
            pl.BlockSpec((L, ffh, E), lambda b: (0, 0, 0)),          # ff2_w
            pl.BlockSpec((L, 1, E), lambda b: (0, 0, 0)),            # ff2_b
            pl.BlockSpec((L, 1, E), lambda b: (0, 0, 0)),            # ln2_g
            pl.BlockSpec((L, 1, E), lambda b: (0, 0, 0)),            # ln2_b
            pl.BlockSpec((1, E), lambda b: (0, 0)),                  # norm2_g
            pl.BlockSpec((1, E), lambda b: (0, 0)),                  # norm2_b
            pl.BlockSpec((E, v_pad), lambda b: (0, 0)),              # head_w (padded)
            pl.BlockSpec((1, v_pad), lambda b: (0, 0)),              # head_b (padded)
        ],
        out_specs=pl.BlockSpec((1, T, v_pad), lambda b: (b, 0, 0)),
    )

    logits_pad = pl.pallas_call(
        kernel,
        out_shape=jax.ShapeDtypeStruct((B, T, v_pad), jnp.float32),
        grid_spec=grid_spec,
        compiler_params=pltpu.CompilerParams(
            dimension_semantics=("parallel",)),
    )(tok, pos, kparams["norm_g"], kparams["norm_b"],
      kparams["wqkv"], kparams["bqkv"], kparams["proj_w"], kparams["proj_b"],
      kparams["ln1_g"], kparams["ln1_b"],
      kparams["ff1_w"], kparams["ff1_b"], kparams["ff2_w"], kparams["ff2_b"],
      kparams["ln2_g"], kparams["ln2_b"],
      kparams["norm2_g"], kparams["norm2_b"],
      kparams["head_w"], kparams["head_b"])

    return logits_pad[:, :, :vocab_size]


# ------------------------------------------------------------------ params ---

def init_raw_params(key, vocab_size, embed_size, head_size, block_size,
                    n_heads, n_layers):
    """Deterministic synthetic parameters in 'torch-like' layout."""
    E, H, hs, L = embed_size, n_heads, head_size, n_layers
    ks = jax.random.split(key, 12)

    def w(k, shape, scale=0.02):
        return (scale * jax.random.normal(k, shape)).astype(jnp.float32)

    return {
        "tok_emb": w(ks[0], (vocab_size, E)),
        "pos_emb": w(ks[1], (block_size, E)),
        "norm_g": jnp.ones((E,), jnp.float32),
        "norm_b": jnp.zeros((E,), jnp.float32),
        "norm2_g": jnp.ones((E,), jnp.float32),
        "norm2_b": jnp.zeros((E,), jnp.float32),
        "head_w": w(ks[2], (E, vocab_size)),
        "head_b": w(ks[3], (vocab_size,)),
        # per-layer stacks; the 3H axis is ordered [K heads | Q heads | V heads]
        "w_heads": w(ks[4], (L, 3 * H, E, hs)),
        "b_heads": w(ks[5], (L, 3 * H, hs)),
        "proj_w": w(ks[6], (L, H * hs, E)),
        "proj_b": w(ks[7], (L, E)),
        "ln1_g": jnp.ones((L, E), jnp.float32),
        "ln1_b": jnp.zeros((L, E), jnp.float32),
        "ff1_w": w(ks[8], (L, E, 4 * E)),
        "ff1_b": w(ks[9], (L, 4 * E)),
        "ff2_w": w(ks[10], (L, 4 * E, E)),
        "ff2_b": w(ks[11], (L, E)),
        "ln2_g": jnp.ones((L, E), jnp.float32),
        "ln2_b": jnp.zeros((L, E), jnp.float32),
    }


def prepare_params(raw, n_heads, head_size):
    """One-time re-layout for the fused kernel: fused+padded QKV (Q pre-scaled
    by 1/sqrt(head_size)), fused output projection, padded LM head."""
    H, hs = n_heads, head_size
    L, _, E, _ = raw["w_heads"].shape
    V = raw["head_w"].shape[1]
    qkv = 3 * H * hs
    qkv_pad = ((qkv + 127) // 128) * 128
    v_pad = ((V + 127) // 128) * 128
    scale = 1.0 / math.sqrt(hs)

    wqkv = jnp.transpose(raw["w_heads"], (0, 2, 1, 3)).reshape(L, E, qkv)
    bqkv = raw["b_heads"].reshape(L, 1, qkv)
    # absorb the 1/sqrt(head_size) attention-score scale into the Q projection
    wqkv = wqkv.at[:, :, H * hs:2 * H * hs].multiply(scale)
    bqkv = bqkv.at[:, :, H * hs:2 * H * hs].multiply(scale)
    wqkv = jnp.zeros((L, E, qkv_pad), jnp.float32).at[:, :, :qkv].set(wqkv)
    bqkv = jnp.zeros((L, 1, qkv_pad), jnp.float32).at[:, :, :qkv].set(bqkv)

    head_w = jnp.zeros((E, v_pad), jnp.float32).at[:, :V].set(raw["head_w"])
    head_b = jnp.zeros((1, v_pad), jnp.float32).at[:, :V].set(raw["head_b"][None, :])

    return {
        "tok_emb": raw["tok_emb"],
        "pos_emb": raw["pos_emb"],
        "norm_g": raw["norm_g"][None, :],
        "norm_b": raw["norm_b"][None, :],
        "norm2_g": raw["norm2_g"][None, :],
        "norm2_b": raw["norm2_b"][None, :],
        "head_w": head_w,
        "head_b": head_b,
        "wqkv": wqkv,
        "bqkv": bqkv,
        "proj_w": raw["proj_w"],
        "proj_b": raw["proj_b"][:, None, :],
        "ln1_g": raw["ln1_g"][:, None, :],
        "ln1_b": raw["ln1_b"][:, None, :],
        "ff1_w": raw["ff1_w"],
        "ff1_b": raw["ff1_b"][:, None, :],
        "ff2_w": raw["ff2_w"],
        "ff2_b": raw["ff2_b"][:, None, :],
        "ln2_g": raw["ln2_g"][:, None, :],
        "ln2_b": raw["ln2_b"][:, None, :],
    }


# --------------------------------------------------------- pure-JAX reference

def reference_forward(raw, tokens, n_heads, head_size, vocab_size):
    """Matches the PyTorch module semantics (eval mode), using raw params."""
    H, hs = n_heads, head_size
    B, T = tokens.shape
    L = raw["w_heads"].shape[0]

    def ln(v, g, b):
        mu = v.mean(-1, keepdims=True)
        var = ((v - mu) ** 2).mean(-1, keepdims=True)
        return (v - mu) / jnp.sqrt(var + _EPS) * g + b

    x = jnp.take(raw["tok_emb"], tokens, axis=0) + raw["pos_emb"][:T][None]
    x = ln(x, raw["norm_g"], raw["norm_b"])
    mask = jnp.tril(jnp.ones((T, T), jnp.float32))
    for l in range(L):
        heads = []
        for h in range(H):
            k = x @ raw["w_heads"][l, h] + raw["b_heads"][l, h]
            q = x @ raw["w_heads"][l, H + h] + raw["b_heads"][l, H + h]
            v = x @ raw["w_heads"][l, 2 * H + h] + raw["b_heads"][l, 2 * H + h]
            s = jnp.einsum("bid,bjd->bij", k, q) / jnp.sqrt(jnp.float32(hs))
            s = jnp.where(mask == 0, -jnp.inf, s)
            s = jax.nn.softmax(s, axis=-1)
            heads.append(jnp.einsum("bij,bjd->bid", s, v))
        o = jnp.concatenate(heads, axis=-1)
        y = ln(o @ raw["proj_w"][l] + raw["proj_b"][l] + x,
               raw["ln1_g"][l], raw["ln1_b"][l])
        f = jnp.maximum(y @ raw["ff1_w"][l] + raw["ff1_b"][l], 0.0)
        f = f @ raw["ff2_w"][l] + raw["ff2_b"][l]
        x = ln(f + y, raw["ln2_g"][l], raw["ln2_b"][l])
    x = ln(x, raw["norm2_g"], raw["norm2_b"])
    return x @ raw["head_w"] + raw["head_b"]


# -------------------------------------------------------------------- main ---

if __name__ == "__main__":
    vocab_size = 64
    embed_size = 32
    head_size = 8
    block_size = 16
    n_heads = 4
    n_layers = 2
    # dropout = 0.1 -> eval mode, identity (not applied in kernel)

    B, T = 2, 8
    key = jax.random.PRNGKey(0)
    pkey, xkey = jax.random.split(key)
    raw = init_raw_params(pkey, vocab_size, embed_size, head_size,
                          block_size, n_heads, n_layers)
    kparams = prepare_params(raw, n_heads, head_size)
    tokens = jax.random.randint(xkey, (B, T), 0, vocab_size, dtype=jnp.int32)

    logits = transformer_decoder_forward(kparams, tokens, n_heads=n_heads,
                                         head_size=head_size,
                                         vocab_size=vocab_size)
    logits = jax.block_until_ready(logits)
    assert logits.shape == (B, T, vocab_size)
    assert bool(jnp.all(jnp.isfinite(logits)))

    ref = reference_forward(raw, tokens, n_heads, head_size, vocab_size)
    max_err = float(jnp.max(jnp.abs(logits - ref)))
    assert max_err < 1e-2, f"mismatch vs JAX reference: max abs err = {max_err}"
    print("KERNEL_OK")
</pallas_src>

<mosaic_0001>
module attributes {stable_mosaic.version = 11 : i64} {
  func.func @_fused_decoder_kernel(%arg0: i32, %arg1: memref<1x8x32xf32, #tpu.memory_space<vmem>>, %arg2: memref<8x32xf32, #tpu.memory_space<vmem>>, %arg3: memref<1x32xf32, #tpu.memory_space<vmem>>, %arg4: memref<1x32xf32, #tpu.memory_space<vmem>>, %arg5: memref<2x32x128xf32, #tpu.memory_space<vmem>>, %arg6: memref<2x1x128xf32, #tpu.memory_space<vmem>>, %arg7: memref<2x32x32xf32, #tpu.memory_space<vmem>>, %arg8: memref<2x1x32xf32, #tpu.memory_space<vmem>>, %arg9: memref<2x1x32xf32, #tpu.memory_space<vmem>>, %arg10: memref<2x1x32xf32, #tpu.memory_space<vmem>>, %arg11: memref<2x32x128xf32, #tpu.memory_space<vmem>>, %arg12: memref<2x1x128xf32, #tpu.memory_space<vmem>>, %arg13: memref<2x128x32xf32, #tpu.memory_space<vmem>>, %arg14: memref<2x1x32xf32, #tpu.memory_space<vmem>>, %arg15: memref<2x1x32xf32, #tpu.memory_space<vmem>>, %arg16: memref<2x1x32xf32, #tpu.memory_space<vmem>>, %arg17: memref<1x32xf32, #tpu.memory_space<vmem>>, %arg18: memref<1x32xf32, #tpu.memory_space<vmem>>, %arg19: memref<32x128xf32, #tpu.memory_space<vmem>>, %arg20: memref<1x128xf32, #tpu.memory_space<vmem>>, %arg21: memref<1x8x128xf32, #tpu.memory_space<vmem>>) attributes {dimension_semantics = [#tpu.dimension_semantics<parallel>], iteration_bounds = array<i64: 2>, scalar_prefetch = 0 : i64, scratch_operands = 0 : i64, tpu.core_type = #tpu.core_type<tc>, window_params = [{transform_indices = @transform_0, window_bounds = array<i64: 1, 8, 32>}, {pipeline_mode = #tpu.pipeline_mode<synchronous>, transform_indices = @transform_1, window_bounds = array<i64: 8, 32>}, {pipeline_mode = #tpu.pipeline_mode<synchronous>, transform_indices = @transform_2, window_bounds = array<i64: 1, 32>}, {pipeline_mode = #tpu.pipeline_mode<synchronous>, transform_indices = @transform_3, window_bounds = array<i64: 1, 32>}, {pipeline_mode = #tpu.pipeline_mode<synchronous>, transform_indices = @transform_4, window_bounds = array<i64: 2, 32, 128>}, {pipeline_mode = #tpu.pipeline_mode<synchronous>, transform_indices = @transform_5, window_bounds = array<i64: 2, 1, 128>}, {pipeline_mode = #tpu.pipeline_mode<synchronous>, transform_indices = @transform_6, window_bounds = array<i64: 2, 32, 32>}, {pipeline_mode = #tpu.pipeline_mode<synchronous>, transform_indices = @transform_7, window_bounds = array<i64: 2, 1, 32>}, {pipeline_mode = #tpu.pipeline_mode<synchronous>, transform_indices = @transform_8, window_bounds = array<i64: 2, 1, 32>}, {pipeline_mode = #tpu.pipeline_mode<synchronous>, transform_indices = @transform_9, window_bounds = array<i64: 2, 1, 32>}, {pipeline_mode = #tpu.pipeline_mode<synchronous>, transform_indices = @transform_10, window_bounds = array<i64: 2, 32, 128>}, {pipeline_mode = #tpu.pipeline_mode<synchronous>, transform_indices = @transform_11, window_bounds = array<i64: 2, 1, 128>}, {pipeline_mode = #tpu.pipeline_mode<synchronous>, transform_indices = @transform_12, window_bounds = array<i64: 2, 128, 32>}, {pipeline_mode = #tpu.pipeline_mode<synchronous>, transform_indices = @transform_13, window_bounds = array<i64: 2, 1, 32>}, {pipeline_mode = #tpu.pipeline_mode<synchronous>, transform_indices = @transform_14, window_bounds = array<i64: 2, 1, 32>}, {pipeline_mode = #tpu.pipeline_mode<synchronous>, transform_indices = @transform_15, window_bounds = array<i64: 2, 1, 32>}, {pipeline_mode = #tpu.pipeline_mode<synchronous>, transform_indices = @transform_16, window_bounds = array<i64: 1, 32>}, {pipeline_mode = #tpu.pipeline_mode<synchronous>, transform_indices = @transform_17, window_bounds = array<i64: 1, 32>}, {pipeline_mode = #tpu.pipeline_mode<synchronous>, transform_indices = @transform_18, window_bounds = array<i64: 32, 128>}, {pipeline_mode = #tpu.pipeline_mode<synchronous>, transform_indices = @transform_19, window_bounds = array<i64: 1, 128>}, {transform_indices = @transform_20, window_bounds = array<i64: 1, 8, 128>}]} {
    %0 = tpu.iota {dimensions = array<i32: 0>} : vector<8x8xi32>
    %1 = tpu.iota {dimensions = array<i32: 1>} : vector<8x8xi32>
    %2 = arith.cmpi sle, %1, %0 : vector<8x8xi32>
    %c0 = arith.constant 0 : index
    %c0_0 = arith.constant 0 : index
    %c0_1 = arith.constant 0 : index
    %3 = vector.load %arg1[%c0, %c0_0, %c0_1] : memref<1x8x32xf32, #tpu.memory_space<vmem>>, vector<1x8x32xf32>
    %4 = vector.shape_cast %3 : vector<1x8x32xf32> to vector<8x32xf32>
    %c0_2 = arith.constant 0 : index
    %c0_3 = arith.constant 0 : index
    %5 = vector.load %arg2[%c0_2, %c0_3] : memref<8x32xf32, #tpu.memory_space<vmem>>, vector<8x32xf32>
    %6 = arith.addf %4, %5 : vector<8x32xf32>
    %c0_4 = arith.constant 0 : index
    %c0_5 = arith.constant 0 : index
    %7 = vector.load %arg3[%c0_4, %c0_5] : memref<1x32xf32, #tpu.memory_space<vmem>>, vector<1x32xf32>
    %c0_6 = arith.constant 0 : index
    %c0_7 = arith.constant 0 : index
    %8 = vector.load %arg4[%c0_6, %c0_7] : memref<1x32xf32, #tpu.memory_space<vmem>>, vector<1x32xf32>
    %cst = arith.constant dense<0.000000e+00> : vector<8xf32>
    %9 = vector.multi_reduction <add>, %6, %cst [1] : vector<8x32xf32> to vector<8xf32>
    %10 = vector.shape_cast %9 : vector<8xf32> to vector<8x1xf32>
    %cst_8 = arith.constant 3.200000e+01 : f32
    %11 = vector.broadcast %cst_8 : f32 to vector<8x1xf32>
    %12 = arith.divf %10, %11 : vector<8x1xf32>
    %13 = vector.broadcast %12 : vector<8x1xf32> to vector<8x32xf32>
    %14 = arith.subf %6, %13 : vector<8x32xf32>
    %15 = arith.mulf %14, %14 : vector<8x32xf32>
    %cst_9 = arith.constant dense<0.000000e+00> : vector<8xf32>
    %16 = vector.multi_reduction <add>, %15, %cst_9 [1] : vector<8x32xf32> to vector<8xf32>
    %17 = vector.shape_cast %16 : vector<8xf32> to vector<8x1xf32>
    %cst_10 = arith.constant 3.200000e+01 : f32
    %18 = vector.broadcast %cst_10 : f32 to vector<8x1xf32>
    %19 = arith.divf %17, %18 : vector<8x1xf32>
    %20 = vector.broadcast %12 : vector<8x1xf32> to vector<8x32xf32>
    %21 = arith.subf %6, %20 : vector<8x32xf32>
    %cst_11 = arith.constant 9.99999974E-6 : f32
    %22 = vector.broadcast %cst_11 : f32 to vector<8x1xf32>
    %23 = arith.addf %19, %22 : vector<8x1xf32>
    %24 = math.rsqrt %23 : vector<8x1xf32>
    %25 = vector.broadcast %24 : vector<8x1xf32> to vector<8x32xf32>
    %26 = arith.mulf %21, %25 : vector<8x32xf32>
    %27 = vector.broadcast %7 : vector<1x32xf32> to vector<8x32xf32>
    %28 = arith.mulf %26, %27 : vector<8x32xf32>
    %29 = vector.broadcast %8 : vector<1x32xf32> to vector<8x32xf32>
    %30 = arith.addf %28, %29 : vector<8x32xf32>
    %c0_i32 = arith.constant 0 : i32
    %c2_i32 = arith.constant 2 : i32
    %31 = arith.addi %c0_i32, %c2_i32 : i32
    %c1_i32 = arith.constant 1 : i32
    %32 = scf.for %arg22 = %c0_i32 to %31 step %c1_i32 iter_args(%arg23 = %30) -> (vector<8x32xf32>)  : i32 {
      %65 = arith.index_cast %arg22 : i32 to index
      %c0_30 = arith.constant 0 : index
      %c0_31 = arith.constant 0 : index
      %66 = vector.load %arg5[%65, %c0_30, %c0_31] : memref<2x32x128xf32, #tpu.memory_space<vmem>>, vector<1x32x128xf32>
      %67 = vector.shape_cast %66 : vector<1x32x128xf32> to vector<32x128xf32>
      %cst_32 = arith.constant dense<0.000000e+00> : vector<8x128xf32>
      %68 = tpu.matmul %arg23, %67, %cst_32 {dimension_numbers = #tpu.dot_dimension_numbers<[1], [0], [0], [1], [0, 0, 1, 1], [], []>} : vector<8x32xf32>, vector<32x128xf32>, vector<8x128xf32> -> vector<8x128xf32>
      %69 = arith.index_cast %arg22 : i32 to index
      %c0_33 = arith.constant 0 : index
      %c0_34 = arith.constant 0 : index
      %70 = vector.load %arg6[%69, %c0_33, %c0_34] : memref<2x1x128xf32, #tpu.memory_space<vmem>>, vector<1x1x128xf32>
      %71 = vector.shape_cast %70 : vector<1x1x128xf32> to vector<1x128xf32>
      %72 = vector.broadcast %71 : vector<1x128xf32> to vector<8x128xf32>
      %73 = arith.addf %68, %72 : vector<8x128xf32>
      %74 = vector.extract_strided_slice %73 {offsets = [0, 0], sizes = [8, 8], strides = [1, 1]} : vector<8x128xf32> to vector<8x8xf32>
      %75 = vector.extract_strided_slice %73 {offsets = [0, 32], sizes = [8, 8], strides = [1, 1]} : vector<8x128xf32> to vector<8x8xf32>
      %76 = vector.extract_strided_slice %73 {offsets = [0, 64], sizes = [8, 8], strides = [1, 1]} : vector<8x128xf32> to vector<8x8xf32>
      %cst_35 = arith.constant dense<0.000000e+00> : vector<8x8xf32>
      %77 = tpu.matmul %74, %75, %cst_35 {dimension_numbers = #tpu.dot_dimension_numbers<[1], [1], [0], [0], [0, 0, 1, 0], [], []>} : vector<8x8xf32>, vector<8x8xf32>, vector<8x8xf32> -> vector<8x8xf32>
      %cst_36 = arith.constant -1.000000e+30 : f32
      %78 = vector.broadcast %cst_36 : f32 to vector<8x8xf32>
      %79 = arith.select %2, %77, %78 : vector<8x8xi1>, vector<8x8xf32>
      %cst_37 = arith.constant dense<0xFF800000> : vector<8xf32>
      %80 = vector.multi_reduction <maximumf>, %79, %cst_37 [1] : vector<8x8xf32> to vector<8xf32>
      %81 = vector.shape_cast %80 : vector<8xf32> to vector<8x1xf32>
      %82 = vector.broadcast %81 : vector<8x1xf32> to vector<8x8xf32>
      %83 = arith.subf %79, %82 : vector<8x8xf32>
      %84 = math.exp %83 : vector<8x8xf32>
      %cst_38 = arith.constant dense<0.000000e+00> : vector<8xf32>
      %85 = vector.multi_reduction <add>, %84, %cst_38 [1] : vector<8x8xf32> to vector<8xf32>
      %86 = vector.shape_cast %85 : vector<8xf32> to vector<8x1xf32>
      %87 = tpu.reciprocal %86 {approx = true} : vector<8x1xf32> -> vector<8x1xf32>
      %88 = vector.broadcast %87 : vector<8x1xf32> to vector<8x8xf32>
      %89 = arith.mulf %84, %88 : vector<8x8xf32>
      %cst_39 = arith.constant dense<0.000000e+00> : vector<8x8xf32>
      %90 = tpu.matmul %89, %76, %cst_39 {dimension_numbers = #tpu.dot_dimension_numbers<[1], [0], [0], [1], [0, 0, 1, 1], [], []>} : vector<8x8xf32>, vector<8x8xf32>, vector<8x8xf32> -> vector<8x8xf32>
      %91 = vector.extract_strided_slice %73 {offsets = [0, 8], sizes = [8, 8], strides = [1, 1]} : vector<8x128xf32> to vector<8x8xf32>
      %92 = vector.extract_strided_slice %73 {offsets = [0, 40], sizes = [8, 8], strides = [1, 1]} : vector<8x128xf32> to vector<8x8xf32>
      %93 = vector.extract_strided_slice %73 {offsets = [0, 72], sizes = [8, 8], strides = [1, 1]} : vector<8x128xf32> to vector<8x8xf32>
      %cst_40 = arith.constant dense<0.000000e+00> : vector<8x8xf32>
      %94 = tpu.matmul %91, %92, %cst_40 {dimension_numbers = #tpu.dot_dimension_numbers<[1], [1], [0], [0], [0, 0, 1, 0], [], []>} : vector<8x8xf32>, vector<8x8xf32>, vector<8x8xf32> -> vector<8x8xf32>
      %cst_41 = arith.constant -1.000000e+30 : f32
      %95 = vector.broadcast %cst_41 : f32 to vector<8x8xf32>
      %96 = arith.select %2, %94, %95 : vector<8x8xi1>, vector<8x8xf32>
      %cst_42 = arith.constant dense<0xFF800000> : vector<8xf32>
      %97 = vector.multi_reduction <maximumf>, %96, %cst_42 [1] : vector<8x8xf32> to vector<8xf32>
      %98 = vector.shape_cast %97 : vector<8xf32> to vector<8x1xf32>
      %99 = vector.broadcast %98 : vector<8x1xf32> to vector<8x8xf32>
      %100 = arith.subf %96, %99 : vector<8x8xf32>
      %101 = math.exp %100 : vector<8x8xf32>
      %cst_43 = arith.constant dense<0.000000e+00> : vector<8xf32>
      %102 = vector.multi_reduction <add>, %101, %cst_43 [1] : vector<8x8xf32> to vector<8xf32>
      %103 = vector.shape_cast %102 : vector<8xf32> to vector<8x1xf32>
      %104 = tpu.reciprocal %103 {approx = true} : vector<8x1xf32> -> vector<8x1xf32>
      %105 = vector.broadcast %104 : vector<8x1xf32> to vector<8x8xf32>
      %106 = arith.mulf %101, %105 : vector<8x8xf32>
      %cst_44 = arith.constant dense<0.000000e+00> : vector<8x8xf32>
      %107 = tpu.matmul %106, %93, %cst_44 {dimension_numbers = #tpu.dot_dimension_numbers<[1], [0], [0], [1], [0, 0, 1, 1], [], []>} : vector<8x8xf32>, vector<8x8xf32>, vector<8x8xf32> -> vector<8x8xf32>
      %108 = vector.extract_strided_slice %73 {offsets = [0, 16], sizes = [8, 8], strides = [1, 1]} : vector<8x128xf32> to vector<8x8xf32>
      %109 = vector.extract_strided_slice %73 {offsets = [0, 48], sizes = [8, 8], strides = [1, 1]} : vector<8x128xf32> to vector<8x8xf32>
      %110 = vector.extract_strided_slice %73 {offsets = [0, 80], sizes = [8, 8], strides = [1, 1]} : vector<8x128xf32> to vector<8x8xf32>
      %cst_45 = arith.constant dense<0.000000e+00> : vector<8x8xf32>
      %111 = tpu.matmul %108, %109, %cst_45 {dimension_numbers = #tpu.dot_dimension_numbers<[1], [1], [0], [0], [0, 0, 1, 0], [], []>} : vector<8x8xf32>, vector<8x8xf32>, vector<8x8xf32> -> vector<8x8xf32>
      %cst_46 = arith.constant -1.000000e+30 : f32
      %112 = vector.broadcast %cst_46 : f32 to vector<8x8xf32>
      %113 = arith.select %2, %111, %112 : vector<8x8xi1>, vector<8x8xf32>
      %cst_47 = arith.constant dense<0xFF800000> : vector<8xf32>
      %114 = vector.multi_reduction <maximumf>, %113, %cst_47 [1] : vector<8x8xf32> to vector<8xf32>
      %115 = vector.shape_cast %114 : vector<8xf32> to vector<8x1xf32>
      %116 = vector.broadcast %115 : vector<8x1xf32> to vector<8x8xf32>
      %117 = arith.subf %113, %116 : vector<8x8xf32>
      %118 = math.exp %117 : vector<8x8xf32>
      %cst_48 = arith.constant dense<0.000000e+00> : vector<8xf32>
      %119 = vector.multi_reduction <add>, %118, %cst_48 [1] : vector<8x8xf32> to vector<8xf32>
      %120 = vector.shape_cast %119 : vector<8xf32> to vector<8x1xf32>
      %121 = tpu.reciprocal %120 {approx = true} : vector<8x1xf32> -> vector<8x1xf32>
      %122 = vector.broadcast %121 : vector<8x1xf32> to vector<8x8xf32>
      %123 = arith.mulf %118, %122 : vector<8x8xf32>
      %cst_49 = arith.constant dense<0.000000e+00> : vector<8x8xf32>
      %124 = tpu.matmul %123, %110, %cst_49 {dimension_numbers = #tpu.dot_dimension_numbers<[1], [0], [0], [1], [0, 0, 1, 1], [], []>} : vector<8x8xf32>, vector<8x8xf32>, vector<8x8xf32> -> vector<8x8xf32>
      %125 = vector.extract_strided_slice %73 {offsets = [0, 24], sizes = [8, 8], strides = [1, 1]} : vector<8x128xf32> to vector<8x8xf32>
      %126 = vector.extract_strided_slice %73 {offsets = [0, 56], sizes = [8, 8], strides = [1, 1]} : vector<8x128xf32> to vector<8x8xf32>
      %127 = vector.extract_strided_slice %73 {offsets = [0, 88], sizes = [8, 8], strides = [1, 1]} : vector<8x128xf32> to vector<8x8xf32>
      %cst_50 = arith.constant dense<0.000000e+00> : vector<8x8xf32>
      %128 = tpu.matmul %125, %126, %cst_50 {dimension_numbers = #tpu.dot_dimension_numbers<[1], [1], [0], [0], [0, 0, 1, 0], [], []>} : vector<8x8xf32>, vector<8x8xf32>, vector<8x8xf32> -> vector<8x8xf32>
      %cst_51 = arith.constant -1.000000e+30 : f32
      %129 = vector.broadcast %cst_51 : f32 to vector<8x8xf32>
      %130 = arith.select %2, %128, %129 : vector<8x8xi1>, vector<8x8xf32>
      %cst_52 = arith.constant dense<0xFF800000> : vector<8xf32>
      %131 = vector.multi_reduction <maximumf>, %130, %cst_52 [1] : vector<8x8xf32> to vector<8xf32>
      %132 = vector.shape_cast %131 : vector<8xf32> to vector<8x1xf32>
      %133 = vector.broadcast %132 : vector<8x1xf32> to vector<8x8xf32>
      %134 = arith.subf %130, %133 : vector<8x8xf32>
      %135 = math.exp %134 : vector<8x8xf32>
      %cst_53 = arith.constant dense<0.000000e+00> : vector<8xf32>
      %136 = vector.multi_reduction <add>, %135, %cst_53 [1] : vector<8x8xf32> to vector<8xf32>
      %137 = vector.shape_cast %136 : vector<8xf32> to vector<8x1xf32>
      %138 = tpu.reciprocal %137 {approx = true} : vector<8x1xf32> -> vector<8x1xf32>
      %139 = vector.broadcast %138 : vector<8x1xf32> to vector<8x8xf32>
      %140 = arith.mulf %135, %139 : vector<8x8xf32>
      %cst_54 = arith.constant dense<0.000000e+00> : vector<8x8xf32>
      %141 = tpu.matmul %140, %127, %cst_54 {dimension_numbers = #tpu.dot_dimension_numbers<[1], [0], [0], [1], [0, 0, 1, 1], [], []>} : vector<8x8xf32>, vector<8x8xf32>, vector<8x8xf32> -> vector<8x8xf32>
      %142 = tpu.concatenate %90, %107, %124, %141 in 1 : vector<8x8xf32>, vector<8x8xf32>, vector<8x8xf32>, vector<8x8xf32> -> vector<8x32xf32>
      %143 = arith.index_cast %arg22 : i32 to index
      %c0_55 = arith.constant 0 : index
      %c0_56 = arith.constant 0 : index
      %144 = vector.load %arg7[%143, %c0_55, %c0_56] : memref<2x32x32xf32, #tpu.memory_space<vmem>>, vector<1x32x32xf32>
      %145 = vector.shape_cast %144 : vector<1x32x32xf32> to vector<32x32xf32>
      %cst_57 = arith.constant dense<0.000000e+00> : vector<8x32xf32>
      %146 = tpu.matmul %142, %145, %cst_57 {dimension_numbers = #tpu.dot_dimension_numbers<[1], [0], [0], [1], [0, 0, 1, 1], [], []>} : vector<8x32xf32>, vector<32x32xf32>, vector<8x32xf32> -> vector<8x32xf32>
      %147 = arith.index_cast %arg22 : i32 to index
      %c0_58 = arith.constant 0 : index
      %c0_59 = arith.constant 0 : index
      %148 = vector.load %arg8[%147, %c0_58, %c0_59] : memref<2x1x32xf32, #tpu.memory_space<vmem>>, vector<1x1x32xf32>
      %149 = vector.shape_cast %148 : vector<1x1x32xf32> to vector<1x32xf32>
      %150 = vector.broadcast %149 : vector<1x32xf32> to vector<8x32xf32>
      %151 = arith.addf %146, %150 : vector<8x32xf32>
      %152 = arith.addf %151, %arg23 : vector<8x32xf32>
      %153 = arith.index_cast %arg22 : i32 to index
      %c0_60 = arith.constant 0 : index
      %c0_61 = arith.constant 0 : index
      %154 = vector.load %arg9[%153, %c0_60, %c0_61] : memref<2x1x32xf32, #tpu.memory_space<vmem>>, vector<1x1x32xf32>
      %155 = vector.shape_cast %154 : vector<1x1x32xf32> to vector<1x32xf32>
      %156 = arith.index_cast %arg22 : i32 to index
      %c0_62 = arith.constant 0 : index
      %c0_63 = arith.constant 0 : index
      %157 = vector.load %arg10[%156, %c0_62, %c0_63] : memref<2x1x32xf32, #tpu.memory_space<vmem>>, vector<1x1x32xf32>
      %158 = vector.shape_cast %157 : vector<1x1x32xf32> to vector<1x32xf32>
      %cst_64 = arith.constant dense<0.000000e+00> : vector<8xf32>
      %159 = vector.multi_reduction <add>, %152, %cst_64 [1] : vector<8x32xf32> to vector<8xf32>
      %160 = vector.shape_cast %159 : vector<8xf32> to vector<8x1xf32>
      %cst_65 = arith.constant 3.200000e+01 : f32
      %161 = vector.broadcast %cst_65 : f32 to vector<8x1xf32>
      %162 = arith.divf %160, %161 : vector<8x1xf32>
      %163 = vector.broadcast %162 : vector<8x1xf32> to vector<8x32xf32>
      %164 = arith.subf %152, %163 : vector<8x32xf32>
      %165 = arith.mulf %164, %164 : vector<8x32xf32>
      %cst_66 = arith.constant dense<0.000000e+00> : vector<8xf32>
      %166 = vector.multi_reduction <add>, %165, %cst_66 [1] : vector<8x32xf32> to vector<8xf32>
      %167 = vector.shape_cast %166 : vector<8xf32> to vector<8x1xf32>
      %cst_67 = arith.constant 3.200000e+01 : f32
      %168 = vector.broadcast %cst_67 : f32 to vector<8x1xf32>
      %169 = arith.divf %167, %168 : vector<8x1xf32>
      %170 = vector.broadcast %162 : vector<8x1xf32> to vector<8x32xf32>
      %171 = arith.subf %152, %170 : vector<8x32xf32>
      %cst_68 = arith.constant 9.99999974E-6 : f32
      %172 = vector.broadcast %cst_68 : f32 to vector<8x1xf32>
      %173 = arith.addf %169, %172 : vector<8x1xf32>
      %174 = math.rsqrt %173 : vector<8x1xf32>
      %175 = vector.broadcast %174 : vector<8x1xf32> to vector<8x32xf32>
      %176 = arith.mulf %171, %175 : vector<8x32xf32>
      %177 = vector.broadcast %155 : vector<1x32xf32> to vector<8x32xf32>
      %178 = arith.mulf %176, %177 : vector<8x32xf32>
      %179 = vector.broadcast %158 : vector<1x32xf32> to vector<8x32xf32>
      %180 = arith.addf %178, %179 : vector<8x32xf32>
      %181 = arith.index_cast %arg22 : i32 to index
      %c0_69 = arith.constant 0 : index
      %c0_70 = arith.constant 0 : index
      %182 = vector.load %arg11[%181, %c0_69, %c0_70] : memref<2x32x128xf32, #tpu.memory_space<vmem>>, vector<1x32x128xf32>
      %183 = vector.shape_cast %182 : vector<1x32x128xf32> to vector<32x128xf32>
      %cst_71 = arith.constant dense<0.000000e+00> : vector<8x128xf32>
      %184 = tpu.matmul %180, %183, %cst_71 {dimension_numbers = #tpu.dot_dimension_numbers<[1], [0], [0], [1], [0, 0, 1, 1], [], []>} : vector<8x32xf32>, vector<32x128xf32>, vector<8x128xf32> -> vector<8x128xf32>
      %185 = arith.index_cast %arg22 : i32 to index
      %c0_72 = arith.constant 0 : index
      %c0_73 = arith.constant 0 : index
      %186 = vector.load %arg12[%185, %c0_72, %c0_73] : memref<2x1x128xf32, #tpu.memory_space<vmem>>, vector<1x1x128xf32>
      %187 = vector.shape_cast %186 : vector<1x1x128xf32> to vector<1x128xf32>
      %188 = vector.broadcast %187 : vector<1x128xf32> to vector<8x128xf32>
      %189 = arith.addf %184, %188 : vector<8x128xf32>
      %cst_74 = arith.constant 0.000000e+00 : f32
      %190 = vector.broadcast %cst_74 : f32 to vector<8x128xf32>
      %191 = arith.maximumf %189, %190 : vector<8x128xf32>
      %192 = arith.index_cast %arg22 : i32 to index
      %c0_75 = arith.constant 0 : index
      %c0_76 = arith.constant 0 : index
      %193 = vector.load %arg13[%192, %c0_75, %c0_76] : memref<2x128x32xf32, #tpu.memory_space<vmem>>, vector<1x128x32xf32>
      %194 = vector.shape_cast %193 : vector<1x128x32xf32> to vector<128x32xf32>
      %cst_77 = arith.constant dense<0.000000e+00> : vector<8x32xf32>
      %195 = tpu.matmul %191, %194, %cst_77 {dimension_numbers = #tpu.dot_dimension_numbers<[1], [0], [0], [1], [0, 0, 1, 1], [], []>} : vector<8x128xf32>, vector<128x32xf32>, vector<8x32xf32> -> vector<8x32xf32>
      %196 = arith.index_cast %arg22 : i32 to index
      %c0_78 = arith.constant 0 : index
      %c0_79 = arith.constant 0 : index
      %197 = vector.load %arg14[%196, %c0_78, %c0_79] : memref<2x1x32xf32, #tpu.memory_space<vmem>>, vector<1x1x32xf32>
      %198 = vector.shape_cast %197 : vector<1x1x32xf32> to vector<1x32xf32>
      %199 = vector.broadcast %198 : vector<1x32xf32> to vector<8x32xf32>
      %200 = arith.addf %195, %199 : vector<8x32xf32>
      %201 = arith.addf %200, %180 : vector<8x32xf32>
      %202 = arith.index_cast %arg22 : i32 to index
      %c0_80 = arith.constant 0 : index
      %c0_81 = arith.constant 0 : index
      %203 = vector.load %arg15[%202, %c0_80, %c0_81] : memref<2x1x32xf32, #tpu.memory_space<vmem>>, vector<1x1x32xf32>
      %204 = vector.shape_cast %203 : vector<1x1x32xf32> to vector<1x32xf32>
      %205 = arith.index_cast %arg22 : i32 to index
      %c0_82 = arith.constant 0 : index
      %c0_83 = arith.constant 0 : index
      %206 = vector.load %arg16[%205, %c0_82, %c0_83] : memref<2x1x32xf32, #tpu.memory_space<vmem>>, vector<1x1x32xf32>
      %207 = vector.shape_cast %206 : vector<1x1x32xf32> to vector<1x32xf32>
      %cst_84 = arith.constant dense<0.000000e+00> : vector<8xf32>
      %208 = vector.multi_reduction <add>, %201, %cst_84 [1] : vector<8x32xf32> to vector<8xf32>
      %209 = vector.shape_cast %208 : vector<8xf32> to vector<8x1xf32>
      %cst_85 = arith.constant 3.200000e+01 : f32
      %210 = vector.broadcast %cst_85 : f32 to vector<8x1xf32>
      %211 = arith.divf %209, %210 : vector<8x1xf32>
      %212 = vector.broadcast %211 : vector<8x1xf32> to vector<8x32xf32>
      %213 = arith.subf %201, %212 : vector<8x32xf32>
      %214 = arith.mulf %213, %213 : vector<8x32xf32>
      %cst_86 = arith.constant dense<0.000000e+00> : vector<8xf32>
      %215 = vector.multi_reduction <add>, %214, %cst_86 [1] : vector<8x32xf32> to vector<8xf32>
      %216 = vector.shape_cast %215 : vector<8xf32> to vector<8x1xf32>
      %cst_87 = arith.constant 3.200000e+01 : f32
      %217 = vector.broadcast %cst_87 : f32 to vector<8x1xf32>
      %218 = arith.divf %216, %217 : vector<8x1xf32>
      %219 = vector.broadcast %211 : vector<8x1xf32> to vector<8x32xf32>
      %220 = arith.subf %201, %219 : vector<8x32xf32>
      %cst_88 = arith.constant 9.99999974E-6 : f32
      %221 = vector.broadcast %cst_88 : f32 to vector<8x1xf32>
      %222 = arith.addf %218, %221 : vector<8x1xf32>
      %223 = math.rsqrt %222 : vector<8x1xf32>
      %224 = vector.broadcast %223 : vector<8x1xf32> to vector<8x32xf32>
      %225 = arith.mulf %220, %224 : vector<8x32xf32>
      %226 = vector.broadcast %204 : vector<1x32xf32> to vector<8x32xf32>
      %227 = arith.mulf %225, %226 : vector<8x32xf32>
      %228 = vector.broadcast %207 : vector<1x32xf32> to vector<8x32xf32>
      %229 = arith.addf %227, %228 : vector<8x32xf32>
      scf.yield %229 : vector<8x32xf32>
    }
    %c2_i32_12 = arith.constant 2 : i32
    %c0_13 = arith.constant 0 : index
    %c0_14 = arith.constant 0 : index
    %33 = vector.load %arg17[%c0_13, %c0_14] : memref<1x32xf32, #tpu.memory_space<vmem>>, vector<1x32xf32>
    %c0_15 = arith.constant 0 : index
    %c0_16 = arith.constant 0 : index
    %34 = vector.load %arg18[%c0_15, %c0_16] : memref<1x32xf32, #tpu.memory_space<vmem>>, vector<1x32xf32>
    %cst_17 = arith.constant dense<0.000000e+00> : vector<8xf32>
    %35 = vector.multi_reduction <add>, %32, %cst_17 [1] : vector<8x32xf32> to vector<8xf32>
    %36 = vector.shape_cast %35 : vector<8xf32> to vector<8x1xf32>
    %cst_18 = arith.constant 3.200000e+01 : f32
    %37 = vector.broadcast %cst_18 : f32 to vector<8x1xf32>
    %38 = arith.divf %36, %37 : vector<8x1xf32>
    %39 = vector.broadcast %38 : vector<8x1xf32> to vector<8x32xf32>
    %40 = arith.subf %32, %39 : vector<8x32xf32>
    %41 = arith.mulf %40, %40 : vector<8x32xf32>
    %cst_19 = arith.constant dense<0.000000e+00> : vector<8xf32>
    %42 = vector.multi_reduction <add>, %41, %cst_19 [1] : vector<8x32xf32> to vector<8xf32>
    %43 = vector.shape_cast %42 : vector<8xf32> to vector<8x1xf32>
    %cst_20 = arith.constant 3.200000e+01 : f32
    %44 = vector.broadcast %cst_20 : f32 to vector<8x1xf32>
    %45 = arith.divf %43, %44 : vector<8x1xf32>
    %46 = vector.broadcast %38 : vector<8x1xf32> to vector<8x32xf32>
    %47 = arith.subf %32, %46 : vector<8x32xf32>
    %cst_21 = arith.constant 9.99999974E-6 : f32
    %48 = vector.broadcast %cst_21 : f32 to vector<8x1xf32>
    %49 = arith.addf %45, %48 : vector<8x1xf32>
    %50 = math.rsqrt %49 : vector<8x1xf32>
    %51 = vector.broadcast %50 : vector<8x1xf32> to vector<8x32xf32>
    %52 = arith.mulf %47, %51 : vector<8x32xf32>
    %53 = vector.broadcast %33 : vector<1x32xf32> to vector<8x32xf32>
    %54 = arith.mulf %52, %53 : vector<8x32xf32>
    %55 = vector.broadcast %34 : vector<1x32xf32> to vector<8x32xf32>
    %56 = arith.addf %54, %55 : vector<8x32xf32>
    %c0_22 = arith.constant 0 : index
    %c0_23 = arith.constant 0 : index
    %57 = vector.load %arg19[%c0_22, %c0_23] : memref<32x128xf32, #tpu.memory_space<vmem>>, vector<32x128xf32>
    %cst_24 = arith.constant dense<0.000000e+00> : vector<8x128xf32>
    %58 = tpu.matmul %56, %57, %cst_24 {dimension_numbers = #tpu.dot_dimension_numbers<[1], [0], [0], [1], [0, 0, 1, 1], [], []>} : vector<8x32xf32>, vector<32x128xf32>, vector<8x128xf32> -> vector<8x128xf32>
    %c0_25 = arith.constant 0 : index
    %c0_26 = arith.constant 0 : index
    %59 = vector.load %arg20[%c0_25, %c0_26] : memref<1x128xf32, #tpu.memory_space<vmem>>, vector<1x128xf32>
    %60 = vector.broadcast %59 : vector<1x128xf32> to vector<8x128xf32>
    %61 = arith.addf %58, %60 : vector<8x128xf32>
    %c0_27 = arith.constant 0 : index
    %c0_28 = arith.constant 0 : index
    %c0_29 = arith.constant 0 : index
    %62 = vector.load %arg21[%c0_27, %c0_28, %c0_29] : memref<1x8x128xf32, #tpu.memory_space<vmem>>, vector<1x8x128xf32>
    %63 = vector.shape_cast %62 : vector<1x8x128xf32> to vector<8x128xf32>
    %64 = vector.shape_cast %61 : vector<8x128xf32> to vector<1x8x128xf32>
    tpu.vector_store %arg21[%c0_27, %c0_28, %c0_29], %64 {strides = array<i32>} : memref<1x8x128xf32, #tpu.memory_space<vmem>>, vector<1x8x128xf32>,
    return
  }
  func.func @transform_0(%arg0: i32) -> (i32, i32, i32) {
    %c0_i32 = arith.constant 0 : i32
    %c0_i32_0 = arith.constant 0 : i32
    %c0_i32_1 = arith.constant 0 : i32
    return %arg0, %c0_i32, %c0_i32_0 : i32, i32, i32
  }
  func.func @transform_1(%arg0: i32) -> (i32, i32) {
    %c0_i32 = arith.constant 0 : i32
    %c0_i32_0 = arith.constant 0 : i32
    %c0_i32_1 = arith.constant 0 : i32
    return %c0_i32, %c0_i32_0 : i32, i32
  }
  func.func @transform_2(%arg0: i32) -> (i32, i32) {
    %c0_i32 = arith.constant 0 : i32
    %c0_i32_0 = arith.constant 0 : i32
    %c0_i32_1 = arith.constant 0 : i32
    return %c0_i32, %c0_i32_0 : i32, i32
  }
  func.func @transform_3(%arg0: i32) -> (i32, i32) {
    %c0_i32 = arith.constant 0 : i32
    %c0_i32_0 = arith.constant 0 : i32
    %c0_i32_1 = arith.constant 0 : i32
    return %c0_i32, %c0_i32_0 : i32, i32
  }
  func.func @transform_4(%arg0: i32) -> (i32, i32, i32) {
    %c0_i32 = arith.constant 0 : i32
    %c0_i32_0 = arith.constant 0 : i32
    %c0_i32_1 = arith.constant 0 : i32
    %c0_i32_2 = arith.constant 0 : i32
    return %c0_i32, %c0_i32_0, %c0_i32_1 : i32, i32, i32
  }
  func.func @transform_5(%arg0: i32) -> (i32, i32, i32) {
    %c0_i32 = arith.constant 0 : i32
    %c0_i32_0 = arith.constant 0 : i32
    %c0_i32_1 = arith.constant 0 : i32
    %c0_i32_2 = arith.constant 0 : i32
    return %c0_i32, %c0_i32_0, %c0_i32_1 : i32, i32, i32
  }
  func.func @transform_6(%arg0: i32) -> (i32, i32, i32) {
    %c0_i32 = arith.constant 0 : i32
    %c0_i32_0 = arith.constant 0 : i32
    %c0_i32_1 = arith.constant 0 : i32
    %c0_i32_2 = arith.constant 0 : i32
    return %c0_i32, %c0_i32_0, %c0_i32_1 : i32, i32, i32
  }
  func.func @transform_7(%arg0: i32) -> (i32, i32, i32) {
    %c0_i32 = arith.constant 0 : i32
    %c0_i32_0 = arith.constant 0 : i32
    %c0_i32_1 = arith.constant 0 : i32
    %c0_i32_2 = arith.constant 0 : i32
    return %c0_i32, %c0_i32_0, %c0_i32_1 : i32, i32, i32
  }
  func.func @transform_8(%arg0: i32) -> (i32, i32, i32) {
    %c0_i32 = arith.constant 0 : i32
    %c0_i32_0 = arith.constant 0 : i32
    %c0_i32_1 = arith.constant 0 : i32
    %c0_i32_2 = arith.constant 0 : i32
    return %c0_i32, %c0_i32_0, %c0_i32_1 : i32, i32, i32
  }
  func.func @transform_9(%arg0: i32) -> (i32, i32, i32) {
    %c0_i32 = arith.constant 0 : i32
    %c0_i32_0 = arith.constant 0 : i32
    %c0_i32_1 = arith.constant 0 : i32
    %c0_i32_2 = arith.constant 0 : i32
    return %c0_i32, %c0_i32_0, %c0_i32_1 : i32, i32, i32
  }
  func.func @transform_10(%arg0: i32) -> (i32, i32, i32) {
    %c0_i32 = arith.constant 0 : i32
    %c0_i32_0 = arith.constant 0 : i32
    %c0_i32_1 = arith.constant 0 : i32
    %c0_i32_2 = arith.constant 0 : i32
    return %c0_i32, %c0_i32_0, %c0_i32_1 : i32, i32, i32
  }
  func.func @transform_11(%arg0: i32) -> (i32, i32, i32) {
    %c0_i32 = arith.constant 0 : i32
    %c0_i32_0 = arith.constant 0 : i32
    %c0_i32_1 = arith.constant 0 : i32
    %c0_i32_2 = arith.constant 0 : i32
    return %c0_i32, %c0_i32_0, %c0_i32_1 : i32, i32, i32
  }
  func.func @transform_12(%arg0: i32) -> (i32, i32, i32) {
    %c0_i32 = arith.constant 0 : i32
    %c0_i32_0 = arith.constant 0 : i32
    %c0_i32_1 = arith.constant 0 : i32
    %c0_i32_2 = arith.constant 0 : i32
    return %c0_i32, %c0_i32_0, %c0_i32_1 : i32, i32, i32
  }
  func.func @transform_13(%arg0: i32) -> (i32, i32, i32) {
    %c0_i32 = arith.constant 0 : i32
    %c0_i32_0 = arith.constant 0 : i32
    %c0_i32_1 = arith.constant 0 : i32
    %c0_i32_2 = arith.constant 0 : i32
    return %c0_i32, %c0_i32_0, %c0_i32_1 : i32, i32, i32
  }
  func.func @transform_14(%arg0: i32) -> (i32, i32, i32) {
    %c0_i32 = arith.constant 0 : i32
    %c0_i32_0 = arith.constant 0 : i32
    %c0_i32_1 = arith.constant 0 : i32
    %c0_i32_2 = arith.constant 0 : i32
    return %c0_i32, %c0_i32_0, %c0_i32_1 : i32, i32, i32
  }
  func.func @transform_15(%arg0: i32) -> (i32, i32, i32) {
    %c0_i32 = arith.constant 0 : i32
    %c0_i32_0 = arith.constant 0 : i32
    %c0_i32_1 = arith.constant 0 : i32
    %c0_i32_2 = arith.constant 0 : i32
    return %c0_i32, %c0_i32_0, %c0_i32_1 : i32, i32, i32
  }
  func.func @transform_16(%arg0: i32) -> (i32, i32) {
    %c0_i32 = arith.constant 0 : i32
    %c0_i32_0 = arith.constant 0 : i32
    %c0_i32_1 = arith.constant 0 : i32
    return %c0_i32, %c0_i32_0 : i32, i32
  }
  func.func @transform_17(%arg0: i32) -> (i32, i32) {
    %c0_i32 = arith.constant 0 : i32
    %c0_i32_0 = arith.constant 0 : i32
    %c0_i32_1 = arith.constant 0 : i32
    return %c0_i32, %c0_i32_0 : i32, i32
  }
  func.func @transform_18(%arg0: i32) -> (i32, i32) {
    %c0_i32 = arith.constant 0 : i32
    %c0_i32_0 = arith.constant 0 : i32
    %c0_i32_1 = arith.constant 0 : i32
    return %c0_i32, %c0_i32_0 : i32, i32
  }
  func.func @transform_19(%arg0: i32) -> (i32, i32) {
    %c0_i32 = arith.constant 0 : i32
    %c0_i32_0 = arith.constant 0 : i32
    %c0_i32_1 = arith.constant 0 : i32
    return %c0_i32, %c0_i32_0 : i32, i32
  }
  func.func @transform_20(%arg0: i32) -> (i32, i32, i32) {
    %c0_i32 = arith.constant 0 : i32
    %c0_i32_0 = arith.constant 0 : i32
    %c0_i32_1 = arith.constant 0 : i32
    return %arg0, %c0_i32, %c0_i32_0 : i32, i32, i32
  }
}

</mosaic_0001>

<bundles_post_ra>
// kernel: transformer_decoder_forward.1
= control target key start
LH: loop header
LB: loop body
LE: loop exit
PB: predicated region body
PF: predicated region fallthrough
CT: control target
= control target key end

     0   :  { %s2887_s0 = inlined_call_operand.vmem [shape: f32[2,8,32], index: 0, kind: input, shape index: {}]   ;;  %s2888_s1 = inlined_call_operand.vmem [shape: f32[8,32], index: 1, kind: input, shape index: {}]   ;;  %s2889_s2 = inlined_call_operand.vmem [shape: f32[1,32], index: 2, kind: input, shape index: {}]   ;;  %s2890_s3 = inlined_call_operand.vmem [shape: f32[1,32], index: 3, kind: input, shape index: {}]   ;;  %s2891_s4 = inlined_call_operand.vmem [shape: f32[2,32,128], index: 4, kind: input, shape index: {}]   ;;  %s2892_s5 = inlined_call_operand.vmem [shape: f32[2,1,128], index: 5, kind: input, shape index: {}]   ;;  %s2893_s6 = inlined_call_operand.vmem [shape: f32[2,32,32], index: 6, kind: input, shape index: {}]   ;;  %s2894_s7 = inlined_call_operand.vmem [shape: f32[2,1,32], index: 7, kind: input, shape index: {}]   ;;  %s2895_s8 = inlined_call_operand.vmem [shape: f32[2,1,32], index: 8, kind: input, shape index: {}]   ;;  %s2896_s9 = inlined_call_operand.vmem [shape: f32[2,1,32], index: 9, kind: input, shape index: {}]   ;;  %s2897_s10 = inlined_call_operand.vmem [shape: f32[2,32,128], index: 10, kind: input, shape index: {}]   ;;  %s2898_s11 = inlined_call_operand.vmem [shape: f32[2,1,128], index: 11, kind: input, shape index: {}]   ;;  %s2899_s12 = inlined_call_operand.vmem [shape: f32[2,128,32], index: 12, kind: input, shape index: {}]   ;;  %s2900_s13 = inlined_call_operand.vmem [shape: f32[2,1,32], index: 13, kind: input, shape index: {}]   ;;  %s2901_s14 = inlined_call_operand.vmem [shape: f32[2,1,32], index: 14, kind: input, shape index: {}]   ;;  %s2902_s15 = inlined_call_operand.vmem [shape: f32[2,1,32], index: 15, kind: input, shape index: {}]   ;;  %s2903_s16 = inlined_call_operand.vmem [shape: f32[1,32], index: 16, kind: input, shape index: {}]   ;;  %s2904_s17 = inlined_call_operand.vmem [shape: f32[1,32], index: 17, kind: input, shape index: {}]   ;;  %s2905_s18 = inlined_call_operand.vmem [shape: f32[32,128], index: 18, kind: input, shape index: {}]   ;;  %s2906_s19 = inlined_call_operand.vmem [shape: f32[1,128], index: 19, kind: input, shape index: {}]   ;;  %s2907_s20 = inlined_call_operand.hbm [shape: f32[2,8,128], index: 20, kind: output, shape index: {}]  }
   0x1   :  { %2914 = sst [smem:[#allocation10_spill]] %s2887_s0 }
   0x2   :  { %2915 = sst [smem:[#allocation11_spill]] %s2888_s1 }
   0x3   :  { %2916 = sst [smem:[#allocation12_spill]] %s2889_s2 }
   0x4   :  { %2917 = sst [smem:[#allocation13_spill]] %s2890_s3 }
   0x5   :  { %2918 = sst [smem:[#allocation14_spill]] %s2891_s4 }
   0x6   :  { %25 = vsyncpa [#allocation3], 0 }
   0x7   :  { %27 = vsyncpa [#allocation3 + $0x1], 0  ;;  %s2549_s1 = smov 0   ;;  %s2551_s22 = smov 0  }
   0x8   :  { %s2553_s23 = smov 0   ;;  %s2555_s24 = smov 0  }
   0x9 LB: > { %2919 = sst [smem:[#allocation5_spill]] %s2401_s1  ;;  %s2570_s2 = sadd.s32 4294967295, %s2413_s24   ;;  %s2413_s24 = sphi %s2555_s24, %s2937_s24   ;;  %s2409_s23 = sphi %s2553_s23, %s2942_s23   ;;  %s2405_s22 = sphi %s2551_s22, %s2941_s22   ;;  %s2401_s1 = sphi %s2549_s1, %s2940_s1  }
   0xa   : > { %2920 = sst [smem:[#allocation6_spill]] %s2409_s23  ;;  %s1983_s25 = sadd.s32 4294967294, %s2413_s24  }
   0xb   : > { %s2574_s3 = sadd.s32 1, %s2413_s24   ;;  %s465_s26 = sadd.s32 1, %s2409_s23 }
   0xc   : > { %2921 = sst [smem:[#allocation7_spill]] %s2574_s3  ;;  %s462_s27 = ssub.s32 %s2413_s24, %s2574_s3 }
   0xd   : > { %p475_p0 = scmp.ne.s32.totalorder %s2409_s23, %s2405_s22  ;;  %p463_p1 = scmp.eq.s32.totalorder %s462_s27, 0 }
   0xe   : > { %p476_p2 = scmp.eq.s32.totalorder %s2570_s2, 1  ;;  %p481_p3 = scmp.ne.s32.totalorder %s2405_s22, %s2401_s1 }
   0xf   : > { %p482_p4 = scmp.eq.s32.totalorder %s1983_s25, 1  ;;  %p1986_p7 = scmp.ge.s32.totalorder %s2413_s24, 1 }
  0x10   : > { %s2585_s28 = scalar_select %p463_p1, %s2409_s23, %s465_s26  }
  0x11   : > { %p2587_p5 = por %p476_p2, %p475_p0  ;;  %p2591_p6 = por %p482_p4, %p481_p3 }
  0x12   : > { %2922 = sst [smem:[#allocation8_spill]] %s2585_s28  ;;  %p564_p8 = scmp.lt.s32.totalorder %s2413_s24, 3 }
  0x13   : > { %s2924_s29 = scalar_select %p2591_p6, 1, 0 }
  0x14   : > { %p565_p9 = pnand %p1986_p7, %p564_p8 }
  0x15   : > { %2925 = sst [smem:[#allocation9_spill]] %s2924_s29  ;;  %p621_p10 = scmp.lt.s32.totalorder (!%p565_p9), %s2570_s2, 1  ;;  %vm635_vm0 = vcmask (!%p565_p9), 261120   ;;  %v625_v9 = vlaneseq (!%p565_p9) }
  0x16   : > { %568 = sbr.rel (%p565_p9) target bundleno = 3424 (0xd60), region = 100  ;;  %s2926_s26 = sld [smem:[#allocation11_spill]] (!%p565_p9) }
  0x17   : > { %s2927_s23 = sld [smem:[#allocation10_spill]] (!%p565_p9)  ;;  %v2608_v10 = vshrl.u32 (!%p565_p9), %v625_v9, 7  ;;  %v2610_v11 = vand.u32 (!%p565_p9), 127, %v625_v9 }
  0x19   : > { %vm629_vm1 = vcmp.le.s32.totalorder (!%p565_p9), %v2610_v11, %v2608_v10 }
  0x1c   : > { %v631_v0 = vld [vmem:[%s2926_s26] sm:$0xff] (!%p565_p9)  ;;  %s2929_s26 = sld [smem:[#allocation13_spill]] (!%p565_p9) }
  0x1d   : > { %s622_s30 = scalar_select %p621_p10, %s2570_s2, 1 }
  0x1f   : > { %s1988_s0 = sshll.u32 %s622_s30, 3  ;;  %s2911_s30 = sand.u32 1, %s2405_s22  }
  0x20   : > { %s624_s3 = scalar_lea.vmem %s2927_s23, %s1988_s0  ;;  %s2614_s23 = sshll.u32 %s2911_s30, 3 }
  0x21   : > { %v630_v1 = vld [vmem:[%s624_s3] sm:$0xff]  ;;  %s2928_s0 = sld [smem:[#allocation12_spill]]  ;;  %s2627_s30 = smov 0  }
  0x22   : > { %v632_v2 = vadd.f32 %v631_v0, %v630_v1  ;;  %v1990_v18 = vld [vmem:[%s2929_s26] ss:$0 sm:$0xff] }
  0x24   : > { %v636_v3 = vsel %vm635_vm0, %v632_v2, 0.0 }
  0x25   : > { %637 = vadd.xlane.f32.xlu0 %v636_v3 }
  0x27   : > { %v1989_v16 = vld [vmem:[%s2928_s0] ss:$0 sm:$0xff] }
  0xb2   : > { %v638_v4 = vpop.xlane.xlu0 %637 }
  0xb3   : > { %v640_v5 = vmul.f32 0.03125, %v638_v4 }
  0xb5   : > { %v641_v6 = vsub.f32 %v632_v2, %v640_v5 }
  0xb7   : > { %v642_v7 = vmul.f32 %v641_v6, %v641_v6 }
  0xb9   : > { %v643_v8 = vsel %vm635_vm0, %v642_v7, 0.0 }
  0xba   : > { %644 = vadd.xlane.f32.xlu0 %v643_v8 }
 0x147   : > { %v645_v12 = vpop.xlane.xlu0 %644 }
 0x148   : > { %v646_v13 = vmul.f32 0.03125, %v645_v12 }
 0x14a   : > { %v647_v14 = vadd.f32 1e-05, %v646_v13 }
 0x14c   : > { %2319 = vrsqrt.f32 %v647_v14 }
 0x156   : > { %v2320_v15 = vpop.eup %2319 }
 0x157   : > { %v649_v17 = vmul.f32 %v2320_v15, %v641_v6 }
 0x159   : > { %v656_v19 = vmul.f32 %v1989_v16, %v649_v17 }
 0x15b   : > { %v663_v20 = vadd.f32 %v1990_v18, %v656_v19  }
 0x15c LB: >> { %v2423_v21 = vmov 0.0|0.0   ;;  %vm2424_vm2 = vmmov 0   ;;  %v2425_v22 = vmov 0.0   ;;  %s2639_s3 = sshll.u32 %s2421_s30, 5  ;;  %s2930_s21 = sld [smem:[#allocation14_spill]]  ;;  %vm761_vm3 = vcmask 64512   ;;  %s2421_s30 = sphi %s2627_s30, %s669_s30   ;;  %v2417_v20 = vphi %v663_v20, %v2931_v20  }
 0x15d   : >> { %2196 = vmatprep.subr.bf16.mxu1 %v2423_v21  ;;  %2085 = vmatprep.mubr.msk.f32.mxu1 %vm2424_vm2, %v2425_v22  ;;  %s677_s0 = scalar_lea.vmem %s2892_s5, %s2421_s30  ;;  %s2428_s27 = smov 80   ;;  %vm1435_vm4 = vcmask 130048   ;;  %vm1437_vm5 = vcmask 195584  }
 0x15e   : >> { %2098 = vmatprep.subr.mxu0 %v2425_v22  ;;  %2100 = vmatprep.mubr.msk.f32.mxu0 %vm2424_vm2, %v2425_v22  ;;  %v1992_v29 = vld [vmem:[%s677_s0] ss:$0 sm:$0xff]  ;;  %s2429_s29 = smov 88   ;;  %s2430_s1 = smov 72  }
 0x15f   : >> { %s2431_s26 = smov 112   ;;  %s2432_s28 = smov 104  }
 0x160   : >> { %s2436_s0 = smov 40  }
 0x162   : >> { %s672_s25 = scalar_lea.vmem %s2930_s21, %s2639_s3  ;;  %s2426_s21 = smov 120  }
 0x163   : >> { %v673_v23 = vld [vmem:[%s672_s25] sm:$0xff]  ;;  %v674_v24 = vld [vmem:[%s672_s25 + $0x8] sm:$0xff]  ;;  %v675_v25 = vld [vmem:[%s672_s25 + $0x10] sm:$0xff] }
 0x164   : >> { %v2197_v26 = vpack.c.bf16 %v674_v24, %v673_v23  ;;  %v676_v27 = vld [vmem:[%s672_s25 + $0x18] sm:$0xff]  ;;  %s2427_s25 = smov 96  }
 0x165   : >> { %v2200_v28 = vpack.c.bf16 %v676_v27, %v675_v25 }
 0x166   : >> { %2198 = vmatpush3.bf16.msra.mxu1 %v2197_v26 }
 0x167   : >> { %2199 = vmatprep.subr.bf16.mxu1 %v2423_v21 }
 0x16a   : >> { %2201 = vmatpush3.bf16.msra.mxu1 %v2200_v28 }
 0x16b   : >> { %2088 = vmatprep.subr.mxu1 %v2425_v22 }
 0x16d   : >> { %2086 = vmatmul.mubr.msk.f32.vlgmr.msra.gmra.mrb[0].mxu1 %vm635_vm0, %v2417_v20 }
 0x16e   : >> { %2090 = vmatprep.mubr.msk.f32.mxu1 %vm2424_vm2, %v2425_v22 }
 0x240   : >> { %v754_v30 = vpop.f32.mrb[0].mxu1 }
 0x241   : >> { %v2658_v31 = vadd.f32 %v1992_v29, %v754_v30  ;;  %v2087_v32 = vpop.f32.mrb[1].mxu1 }
 0x243   : >> { %924 = vrot.lane.b32.xlu1 %v2658_v31, %s2426_s21  ;;  %759 = vrot.lane.b32.xlu0 %v2658_v31, %s2427_s25  ;;  %s1444_s21 = scalar_lea.vmem %s2894_s7, %s2421_s30  ;;  %s1526_s25 = scalar_lea.vmem %s2895_s8, %s2421_s30 }
 0x247   : >> { %1092 = vrot.lane.b32.xlu1 %v2658_v31, %s2428_s27  ;;  %926 = vrot.lane.b32.xlu0 %v2658_v31, %s2429_s29  ;;  %s2434_s29 = smov 64   ;;  %s2435_s27 = smov 48  }
 0x24b   : >> { %1258 = vrot.lane.b32.xlu1 %v2658_v31, %s2430_s1  ;;  %1090 = vrot.lane.b32.xlu0 %v2658_v31, %s2431_s26  ;;  %s2433_s1 = smov 56   ;;  %s1439_s26 = scalar_lea.vmem %s2893_s6, %s2639_s3 }
 0x24f   : >> { %1256 = vrot.lane.b32.xlu0 %v2658_v31, %s2432_s28  ;;  %s2437_s28 = smov 8  }
 0x2b5   : >> { %v925_v33 = vpop.permute.xlu1 %924  ;;  %v760_v34 = vpop.permute.xlu0 %759 }
 0x2b6   : >> { %2089 = vmatpush3.xpose.msk.msra.mxu1 %vm761_vm3, %v760_v34  ;;  %v1441_v34 = vld [vmem:[%s1439_s26 + $0x8] sm:$0xff] }
 0x2b7   : >> { %2093 = vmatprep.subr.mxu1 %v2425_v22 }
 0x2b9   : >> { %2091 = vmatmul.mubr.msk.f32.vlgmr.msra.gmra.mrb[2].mxu1 %vm761_vm3, %v2658_v31  ;;  %v927_v35 = vpop.permute.xlu0 %926  ;;  %v1093_v36 = vpop.permute.xlu1 %1092 }
 0x2ba   : >> { %2099 = vmatpush3.xpose.msk.msra.mxu0 %vm761_vm3, %v927_v35  ;;  %2095 = vmatprep.mubr.msk.f32.mxu1 %vm2424_vm2, %v2425_v22 }
 0x2bb   : >> { %2108 = vmatprep.subr.mxu0 %v2425_v22 }
 0x2bd   : >> { %2101 = vmatmul.mubr.msk.f32.vlgmr.msra.gmra.mrb[0].mxu0 %vm761_vm3, %v925_v33  ;;  %v1091_v37 = vpop.permute.xlu0 %1090  ;;  %v1259_v38 = vpop.permute.xlu1 %1258  ;;  %v1440_v33 = vld [vmem:[%s1439_s26] sm:$0xff] }
 0x2be   : >> { %2109 = vmatpush3.xpose.msk.msra.mxu0 %vm761_vm3, %v1093_v36  ;;  %2110 = vmatprep.mubr.msk.f32.mxu0 %vm2424_vm2, %v2425_v22  ;;  %v2203_v35 = vpack.c.bf16 %v1441_v34, %v1440_v33  ;;  %v2008_v34 = vld [vmem:[%s1526_s25] ss:$0 sm:$0xff] }
 0x2bf   : >> { %2118 = vmatprep.subr.mxu0 %v2425_v22 }
 0x2c1   : >> { %2111 = vmatmul.mubr.msk.f32.vlgmr.msra.gmra.mrb[2].mxu0 %vm761_vm3, %v1091_v37  ;;  %v1257_v39 = vpop.permute.xlu0 %1256 }
 0x2c2   : >> { %2119 = vmatpush3.xpose.msk.msra.mxu0 %vm761_vm3, %v1259_v38  ;;  %2120 = vmatprep.mubr.msk.f32.mxu0 %vm2424_vm2, %v2425_v22 }
 0x2c3   : >> { %2214 = vmatprep.subr.bf16.mxu0 %v2423_v21 }
 0x2c5   : >> { %2121 = vmatmul.mubr.msk.f32.vlgmr.msra.gmra.mrb[4].mxu0 %vm761_vm3, %v1257_v39 }
 0x2c6   : >> { %2182 = vmatprep.mubr.msk.f32.mxu0 %vm2424_vm2, %v2425_v22 }
 0x38c   : >> { %v832_v40 = vpop.f32.mrb[2].mxu1 }
 0x38d   : >> { %v836_v41 = vsel %vm629_vm1, %v832_v40, -1e+30  ;;  %v2092_v42 = vpop.f32.mrb[3].mxu1  ;;  %v1442_v40 = vld [vmem:[%s1439_s26 + $0x10] sm:$0xff] }
 0x38e   : >> { %v837_v43 = vsel %vm761_vm3, %v836_v41, -inf }
 0x38f   : >> { %838 = vmax.xlane.f32.xlu1 %v837_v43 }
 0x390   : >> { %v998_v44 = vpop.f32.mrb[0].mxu0 }
 0x391   : >> { %v1002_v45 = vsel %vm629_vm1, %v998_v44, -1e+30  ;;  %v2102_v46 = vpop.f32.mrb[1].mxu0 }
 0x392   : >> { %v1003_v47 = vsel %vm761_vm3, %v1002_v45, -inf }
 0x393   : >> { %1004 = vmax.xlane.f32.xlu0 %v1003_v47 }
 0x394   : >> { %v1164_v48 = vpop.f32.mrb[2].mxu0 }
 0x395   : >> { %v1168_v49 = vsel %vm629_vm1, %v1164_v48, -1e+30  ;;  %v2112_v50 = vpop.f32.mrb[3].mxu0 }
 0x396   : >> { %v1169_v51 = vsel %vm761_vm3, %v1168_v49, -inf }
 0x397   : >> { %1170 = vmax.xlane.f32.xlu0 %v1169_v51 }
 0x398   : >> { %v1330_v52 = vpop.f32.mrb[4].mxu0 }
 0x399   : >> { %v1334_v53 = vsel %vm629_vm1, %v1330_v52, -1e+30  ;;  %v2122_v54 = vpop.f32.mrb[5].mxu0 }
 0x39a   : >> { %v1335_v55 = vsel %vm761_vm3, %v1334_v53, -inf }
 0x39b   : >> { %1336 = vmax.xlane.f32.xlu1 %v1335_v55 }
 0x3ac   : >> { %1014 = vrot.lane.b32.xlu1 %v2658_v31, %s2433_s1  ;;  %s2438_s1 = smov 16  }
 0x41c   : >> { %v839_v56 = vpop.xlane.xlu1 %838 }
 0x41d   : >> { %v840_v57 = vsub.f32 %v836_v41, %v839_v56  ;;  %v1443_v41 = vld [vmem:[%s1439_s26 + $0x18] sm:$0xff]  ;;  %s1662_s26 = scalar_lea.vmem %s2900_s13, %s2421_s30 }
 0x41e   : >> { %v2206_v42 = vpack.c.bf16 %v1443_v41, %v1442_v40 }
 0x41f   : >> { %v841_v58 = vmul.f32 1.442695, %v840_v57 }
 0x420   : >> { %v1005_v59 = vpop.xlane.xlu0 %1004 }
 0x421   : >> { %2321 = vpow2.f32 %v841_v58  ;;  %v1006_v60 = vsub.f32 %v1002_v45, %v1005_v59 }
 0x423   : >> { %v1007_v61 = vmul.f32 1.442695, %v1006_v60 }
 0x424   : >> { %v1171_v7 = vpop.xlane.xlu0 %1170 }
 0x425   : >> { %2323 = vpow2.f32 %v1007_v61  ;;  %v1172_v8 = vsub.f32 %v1168_v49, %v1171_v7 }
 0x427   : >> { %v1173_v9 = vmul.f32 1.442695, %v1172_v8 }
 0x428   : >> { %v1337_v62 = vpop.xlane.xlu1 %1336 }
 0x429   : >> { %v1338_v63 = vsub.f32 %v1334_v53, %v1337_v62  ;;  %v2006_v53 = vld [vmem:[%s1444_s21] ss:$0 sm:$0xff] }
 0x42b   : >> { %v2322_v0 = vpop.eup %2321  ;;  %v1339_v1 = vmul.f32 1.442695, %v1338_v63 }
 0x42c   : >> { %v843_v2 = vsel %vm761_vm3, %v2322_v0, 0.0  ;;  %v1015_v14 = vpop.permute.xlu1 %1014 }
 0x42d   : >> { %2325 = vpow2.f32 %v1339_v1  ;;  %844 = vadd.xlane.f32.xlu0 %v843_v2 }
 0x42e   : >> { %2327 = vpow2.f32 %v1173_v9 }
 0x42f   : >> { %v2324_v3 = vpop.eup %2323 }
 0x430   : >> { %v1009_v4 = vsel %vm761_vm3, %v2324_v3, 0.0 }
 0x431   : >> { %1010 = vadd.xlane.f32.xlu1 %v1009_v4 }
 0x437   : >> { %v2326_v5 = vpop.eup %2325 }
 0x438   : >> { %v1341_v6 = vsel %vm761_vm3, %v2326_v5, 0.0  ;;  %v2328_v12 = vpop.eup %2327 }
 0x439   : >> { %1342 = vadd.xlane.f32.xlu1 %v1341_v6  ;;  %v1175_v13 = vsel %vm761_vm3, %v2328_v12, 0.0 }
 0x443   : >> { %848 = vrot.lane.b32.xlu0 %v2658_v31, %s2434_s29  ;;  %s2439_s29 = smov 24  }
 0x44a   : >> { %1180 = vrot.lane.b32.xlu1 %v2658_v31, %s2435_s27 }
 0x462   : >> { %1176 = vadd.xlane.f32.xlu0 %v1175_v13 }
 0x478   : >> { %1346 = vrot.lane.b32.xlu0 %v2658_v31, %s2436_s0 }
 0x4ba   : >> { %v845_v15 = vpop.xlane.xlu0 %844 }
 0x4bb   : >> { %2329 = vrcp.f32 %v845_v15 }
 0x4be   : >> { %v849_v16 = vpop.permute.xlu0 %848  ;;  %v1011_v17 = vpop.xlane.xlu1 %1010 }
 0x4bf   : >> { %2331 = vrcp.f32 %v1011_v17  ;;  %2094 = vmatpush3.msra.mxu1 %v849_v16 }
 0x4c0   : >> { %2103 = vmatprep.subr.mxu1 %v2425_v22 }
 0x4c5   : >> { %v2330_v18 = vpop.eup %2329 }
 0x4c6   : >> { %v847_v19 = vmul.f32 %v2330_v18, %v2322_v0  ;;  %v1343_v23 = vpop.xlane.xlu1 %1342 }
 0x4c8   : >> { %2096 = vmatmul.mubr.msk.f32.vlgmr.msra.gmra.mrb[4].mxu1 %vm761_vm3, %v847_v19 }
 0x4c9   : >> { %v2332_v24 = vpop.eup %2331  ;;  %2104 = vmatpush3.msra.mxu1 %v1015_v14  ;;  %2105 = vmatprep.mubr.msk.f32.mxu1 %vm2424_vm2, %v2425_v22 }
 0x4ca   : >> { %v1013_v25 = vmul.f32 %v2332_v24, %v2324_v3  ;;  %v1181_v26 = vpop.permute.xlu1 %1180  ;;  %2113 = vmatprep.subr.mxu1 %v2425_v22 }
 0x4cc   : >> { %2106 = vmatmul.mubr.msk.f32.vlgmr.msra.gmra.mrb[6].mxu1 %vm761_vm3, %v1013_v25 }
 0x4cd   : >> { %2114 = vmatpush3.msra.mxu1 %v1181_v26  ;;  %2115 = vmatprep.mubr.msk.f32.mxu1 %vm2424_vm2, %v2425_v22 }
 0x4ce   : >> { %2123 = vmatprep.subr.mxu1 %v2425_v22 }
 0x4ef   : >> { %v1177_v27 = vpop.xlane.xlu0 %1176 }
 0x4f0   : >> { %2333 = vrcp.f32 %v1177_v27 }
 0x4f1   : >> { %2335 = vrcp.f32 %v1343_v23 }
 0x4f3   : >> { %v1347_v31 = vpop.permute.xlu0 %1346 }
 0x4fa   : >> { %v2334_v28 = vpop.eup %2333 }
 0x4fb   : >> { %v1179_v29 = vmul.f32 %v2334_v28, %v2328_v12  ;;  %v2336_v30 = vpop.eup %2335 }
 0x4fc   : >> { %v1345_v32 = vmul.f32 %v2336_v30, %v2326_v5 }
 0x4fd   : >> { %2116 = vmatmul.mubr.msk.f32.vlgmr.msra.gmra.mrb[8].mxu1 %vm761_vm3, %v1179_v29 }
 0x4fe   : >> { %2124 = vmatpush3.msra.mxu1 %v1347_v31  ;;  %2125 = vmatprep.mubr.msk.f32.mxu1 %vm2424_vm2, %v2425_v22 }
 0x4ff   : >> { %2202 = vmatprep.subr.bf16.mxu1 %v2423_v21 }
 0x501   : >> { %2126 = vmatmul.mubr.msk.f32.vlgmr.msra.gmra.mrb[10].mxu1 %vm761_vm3, %v1345_v32 }
 0x502   : >> { %2136 = vmatprep.mubr.msk.f32.mxu1 %vm2424_vm2, %v2425_v22  ;;  %2204 = vmatpush3.bf16.msra.mxu1 %v2203_v35 }
 0x503   : >> { %2205 = vmatprep.subr.bf16.mxu1 %v2423_v21 }
 0x506   : >> { %2207 = vmatpush3.bf16.msra.mxu1 %v2206_v42 }
 0x507   : >> { %2208 = vmatprep.subr.bf16.mxu1 %v2423_v21 }
 0x59b   : >> { %v920_v36 = vpop.f32.mrb[4].mxu1 }
 0x59c   : >> { %v2097_v37 = vpop.f32.mrb[5].mxu1 }
 0x59f   : >> { %v1086_v38 = vpop.f32.mrb[6].mxu1 }
 0x5a0   : >> { %1423 = vrot.lane.b32.xlu1 %v1086_v38, %s2437_s28  ;;  %v2107_v39 = vpop.f32.mrb[7].mxu1  ;;  %s1557_s28 = scalar_lea.vmem %s2897_s10, %s2639_s3  ;;  %s1562_s3 = scalar_lea.vmem %s2898_s11, %s2421_s30 }
 0x5a1   : >> { %v1558_v63 = vld [vmem:[%s1557_s28] sm:$0xff]  ;;  %v1559_v0 = vld [vmem:[%s1557_s28 + $0x8] sm:$0xff]  ;;  %v1560_v1 = vld [vmem:[%s1557_s28 + $0x10] sm:$0xff] }
 0x5a2   : >> { %v2209_v2 = vpack.c.bf16 %v1559_v0, %v1558_v63  ;;  %v2010_v41 = vld [vmem:[%s1562_s3] ss:$0 sm:$0xff]  ;;  %s1743_s3 = scalar_lea.vmem %s2902_s15, %s2421_s30 }
 0x5d0   : >> { %v1252_v43 = vpop.f32.mrb[8].mxu1 }
 0x5d1   : >> { %1427 = vrot.lane.b32.xlu0 %v1252_v43, %s2438_s1  ;;  %v2117_v44 = vpop.f32.mrb[9].mxu1  ;;  %s2012_s1 = sshll.u32 %s2421_s30, 7 }
 0x5d2   : >> { %s2754_s0 = scalar_lea.vmem %s2899_s12, %s2012_s1  ;;  %s1528_s1 = scalar_lea.vmem %s2896_s9, %s2421_s30 }
 0x5d3   : >> { %v1646_v4 = vld [vmem:[%s2754_s0] sm:$0xff]  ;;  %v1647_v5 = vld [vmem:[%s2754_s0 + $0x8] sm:$0xff]  ;;  %v1648_v6 = vld [vmem:[%s2754_s0 + $0x10] sm:$0xff] }
 0x5d4   : >> { %v1418_v45 = vpop.f32.mrb[10].mxu1  ;;  %v2215_v7 = vpack.c.bf16 %v1647_v5, %v1646_v4  ;;  %v1649_v8 = vld [vmem:[%s2754_s0 + $0x18] sm:$0xff]  ;;  %v1650_v12 = vld [vmem:[%s2754_s0 + $0x20] sm:$0xff]  ;;  %v1651_v13 = vld [vmem:[%s2754_s0 + $0x28] sm:$0xff] }
 0x5d5   : >> { %1431 = vrot.lane.b32.xlu1 %v1418_v45, %s2439_s29  ;;  %v2127_v46 = vpop.f32.mrb[11].mxu1  ;;  %v2218_v9 = vpack.c.bf16 %v1649_v8, %v1648_v6  ;;  %v2221_v14 = vpack.c.bf16 %v1651_v13, %v1650_v12  ;;  %v1652_v15 = vld [vmem:[%s2754_s0 + $0x30] sm:$0xff]  ;;  %v1653_v16 = vld [vmem:[%s2754_s0 + $0x38] sm:$0xff]  ;;  %v1654_v18 = vld [vmem:[%s2754_s0 + $0x40] sm:$0xff] }
 0x5d6   : >> { %2216 = vmatpush3.bf16.msra.mxu0 %v2215_v7  ;;  %v2224_v17 = vpack.c.bf16 %v1653_v16, %v1652_v15  ;;  %v1655_v19 = vld [vmem:[%s2754_s0 + $0x48] sm:$0xff]  ;;  %v1656_v24 = vld [vmem:[%s2754_s0 + $0x50] sm:$0xff]  ;;  %v1657_v25 = vld [vmem:[%s2754_s0 + $0x58] sm:$0xff] }
 0x5d7   : >> { %2217 = vmatprep.subr.bf16.mxu0 %v2423_v21  ;;  %v2227_v23 = vpack.c.bf16 %v1655_v19, %v1654_v18  ;;  %v2230_v26 = vpack.c.bf16 %v1657_v25, %v1656_v24  ;;  %v1658_v27 = vld [vmem:[%s2754_s0 + $0x60] sm:$0xff]  ;;  %v1659_v28 = vld [vmem:[%s2754_s0 + $0x68] sm:$0xff]  ;;  %v1660_v38 = vld [vmem:[%s2754_s0 + $0x70] sm:$0xff] }
 0x5d8   : >> { %v2233_v29 = vpack.c.bf16 %v1659_v28, %v1658_v27  ;;  %v1661_v39 = vld [vmem:[%s2754_s0 + $0x78] sm:$0xff]  ;;  %v2013_v46 = vld [vmem:[%s1662_s26] ss:$0 sm:$0xff] }
 0x5d9   : >> { %v2236_v40 = vpack.c.bf16 %v1661_v39, %v1660_v38 }
 0x5da   : >> { %2219 = vmatpush3.bf16.msra.mxu0 %v2218_v9 }
 0x5db   : >> { %2220 = vmatprep.subr.bf16.mxu0 %v2423_v21 }
 0x5de   : >> { %2222 = vmatpush3.bf16.msra.mxu0 %v2221_v14 }
 0x5df   : >> { %2223 = vmatprep.subr.bf16.mxu0 %v2423_v21 }
 0x5e2   : >> { %2225 = vmatpush3.bf16.msra.mxu0 %v2224_v17 }
 0x5e3   : >> { %2226 = vmatprep.subr.bf16.mxu0 %v2423_v21 }
 0x5e6   : >> { %2228 = vmatpush3.bf16.msra.mxu0 %v2227_v23 }
 0x5e7   : >> { %2229 = vmatprep.subr.bf16.mxu0 %v2423_v21 }
 0x5ea   : >> { %2231 = vmatpush3.bf16.msra.mxu0 %v2230_v26 }
 0x5eb   : >> { %2232 = vmatprep.subr.bf16.mxu0 %v2423_v21 }
 0x5ee   : >> { %2234 = vmatpush3.bf16.msra.mxu0 %v2233_v29 }
 0x5ef   : >> { %2235 = vmatprep.subr.bf16.mxu0 %v2423_v21 }
 0x5f2   : >> { %2237 = vmatpush3.bf16.msra.mxu0 %v2236_v40 }
 0x612   : >> { %v1424_v47 = vpop.permute.xlu1 %1423 }
 0x613   : >> { %v1434_v49 = vsel %vm761_vm3, %v920_v36, %v1424_v47  ;;  %v2009_v36 = vld [vmem:[%s1528_s1] ss:$0 sm:$0xff]  ;;  %s1741_s1 = scalar_lea.vmem %s2901_s14, %s2421_s30  ;;  %s669_s30 = sadd.s32 1, %s2421_s30  }
 0x614   : >> { %p666_p11 = scmp.ge.s32.totalorder %s669_s30, 2  }
 0x615   : > { %v1801_v6 = vld [vmem:[%s2905_s18] sm:$0xff] (%p666_p11)  ;;  %v1802_v7 = vld [vmem:[%s2905_s18 + $0x8] sm:$0xff] (%p666_p11)  ;;  %v1803_v10 = vld [vmem:[%s2905_s18 + $0x10] sm:$0xff] (%p666_p11)  ;;  %v2440_v11 = vmov (%p666_p11), 0.0|0.0   ;;  %vm2441_vm6 = vmmov (%p666_p11), 0   ;;  %v2442_v12 = vmov (%p666_p11), 0.0  }
 0x616   : > { %2238 = vmatprep.subr.bf16.mxu0 (%p666_p11), %v2440_v11  ;;  %v2239_v8 = vpack.c.bf16 (%p666_p11), %v1802_v7, %v1801_v6  ;;  %v1804_v9 = vld [vmem:[%s2905_s18 + $0x18] sm:$0xff] (%p666_p11)  ;;  %v2016_v18 = vld [vmem:[%s2903_s16] ss:$0 sm:$0xff] (%p666_p11)  ;;  %s2021_s30 = sshll.u32 (%p666_p11), %s2570_s2, 7  ;;  %s2934_s25 = sand.u32 (%p666_p11), 1, %s2405_s22  }
 0x617   : > { %v2242_v13 = vpack.c.bf16 (%p666_p11), %v1804_v9, %v1803_v10  ;;  %v2017_v23 = vld [vmem:[%s2904_s17] ss:$0 sm:$0xff] (%p666_p11)  ;;  %s1887_s26 = scalar_lea.sflag (%p666_p11), [#allocation3], %s2934_s25  ;;  %s2443_s0 = smov (%p666_p11), [#allocation2]  }
 0x618   : > { %v2018_v26 = vld [vmem:[%s2906_s19] ss:$0 sm:$0xff] (%p666_p11) }
 0x643   : >> { %v1428_v48 = vpop.permute.xlu0 %1427 }
 0x644   : >> { %v1436_v50 = vsel %vm1435_vm4, %v1434_v49, %v1428_v48 }
 0x647   : >> { %v1432_v51 = vpop.permute.xlu1 %1431 }
 0x648   : >> { %v1438_v52 = vsel %vm1437_vm5, %v1436_v50, %v1432_v51 }
 0x649   : >> { %2137 = vmatmul.mubr.msk.f32.vlgmr.msra.gmra.mrb[12].mxu1 %vm635_vm0, %v1438_v52 }
 0x64a   : >> { %2147 = vmatprep.mubr.msk.f32.mxu1 %vm2424_vm2, %v2425_v22  ;;  %2210 = vmatpush3.bf16.msra.mxu1 %v2209_v2 }
 0x64b   : >> { %2211 = vmatprep.subr.bf16.mxu1 %v2423_v21 }
 0x71c   : >> { %v1521_v54 = vpop.f32.mrb[12].mxu1 }
 0x71d   : >> { %v1522_v55 = vadd.f32 %v2006_v53, %v1521_v54  ;;  %v2138_v56 = vpop.f32.mrb[13].mxu1 }
 0x71f   : >> { %v1525_v57 = vadd.f32 %v2417_v20, %v1522_v55  ;;  %v1561_v20 = vld [vmem:[%s1557_s28 + $0x18] sm:$0xff]  ;;  %s2932_s28 = scalar_lea.vmem (%p666_p11), [#allocation2], %s2614_s23 }
 0x720   : >> { %v2212_v3 = vpack.c.bf16 %v1561_v20, %v1560_v1  ;;  %s2933_s21 = smov (%p666_p11), %s2932_s28 }
 0x721   : >> { %v1530_v58 = vsel %vm635_vm0, %v1525_v57, 0.0 }
 0x722   : >> { %1531 = vadd.xlane.f32.xlu0 %v1530_v58  ;;  %2213 = vmatpush3.bf16.msra.mxu1 %v2212_v3 }
 0x7af   : >> { %v1532_v59 = vpop.xlane.xlu0 %1531 }
 0x7b0   : >> { %v1533_v60 = vmul.f32 0.03125, %v1532_v59 }
 0x7b2   : >> { %v1534_v61 = vsub.f32 %v1525_v57, %v1533_v60 }
 0x7b4   : >> { %v1535_v62 = vmul.f32 %v1534_v61, %v1534_v61 }
 0x7b6   : >> { %v1536_v22 = vsel %vm635_vm0, %v1535_v62, 0.0 }
 0x7b7   : >> { %1537 = vadd.xlane.f32.xlu1 %v1536_v22  ;;  %v2015_v22 = vld [vmem:[%s1743_s3] ss:$0 sm:$0xff]  ;;  %s2841_s3 = scalar_lea.hbm (%p666_p11), %s2907_s20, %s2021_s30 }
 0x844   : >> { %v1538_v30 = vpop.xlane.xlu1 %1537 }
 0x845   : >> { %v1539_v31 = vmul.f32 0.03125, %v1538_v30 }
 0x847   : >> { %v1540_v32 = vadd.f32 1e-05, %v1539_v31 }
 0x849   : >> { %2337 = vrsqrt.f32 %v1540_v32 }
 0x853   : >> { %v2338_v33 = vpop.eup %2337 }
 0x854   : >> { %v1542_v35 = vmul.f32 %v2338_v33, %v1534_v61  ;;  %v2014_v61 = vld [vmem:[%s1741_s1] ss:$0 sm:$0xff]  ;;  %s1900_s1 = sshll.u32 (%p666_p11), %s2932_s28, 4  ;;  %s2347_s28 = sshll.u32 (%p666_p11), %s2443_s0, 4  ;;  %s2843_s1 = int_to_ptr.vmem [resolvable:$true] %s1900_s1  ;;  %s2348_s28 = int_to_ptr.vmem [resolvable:$false] %s2347_s28 }
 0x855   : > { %s2343_s2 = scalar_lea.vmem (%p666_p11), %s2843_s1, 128  ;;  %s2349_s29 = scalar_lea.vmem (%p666_p11), %s2348_s28, 256 }
 0x856   : >> { %v1549_v37 = vmul.f32 %v2008_v34, %v1542_v35  ;;  %p2344_p12 = scmp.ne.s32.totalorder (%p666_p11), %s2843_s1, %s2343_s2  ;;  %p2350_p1 = scmp.lt.s32.totalorder (%p666_p11), %s2843_s1, %s2348_s28 }
 0x857   : > { %p2351_p2 = scmp.lt.s32.totalorder (%p666_p11), %s2349_s29, %s2343_s2 }
 0x858   : >> { %v1556_v21 = vadd.f32 %v2009_v36, %v1549_v37  ;;  %p2345_p13 = pnand (%p666_p11), %p2344_p12, %p2587_p5 }
 0x859   : > { %p2352_p3 = por (%p666_p11), %p2351_p2, %p2350_p1 }
 0x85a   : >> { %2148 = vmatmul.mubr.msk.f32.vlgmr.msra.gmra.mrb[14].mxu1 %vm635_vm0, %v1556_v21  ;;  %p2346_p0 = pneg (%p666_p11), %p2345_p13 }
 0x85c   : > { %p2353_p4 = pnand (%p666_p11), %p2352_p3, %p2346_p0 }
 0x92d   : >> { %v1639_v42 = vpop.f32.mrb[14].mxu1 }
 0x92e   : >> { %v1640_v43 = vadd.f32 %v2010_v41, %v1639_v42  ;;  %v2149_v44 = vpop.f32.mrb[15].mxu1 }
 0x930   : >> { %v1643_v45 = vmax.f32 %v1640_v43, 0.0 }
 0x932   : >> { %2183 = vmatmul.mubr.f32.vlgmr.msra.gmra.mrb[6].mxu0 %v1643_v45 }
 0x933   : > { %2193 = vmatprep.mubr.msk.f32.mxu0 (%p666_p11), %vm2441_vm6, %v2442_v12  ;;  %2240 = vmatpush3.bf16.msra.mxu0 (%p666_p11), %v2239_v8 }
 0x934   : > { %2241 = vmatprep.subr.bf16.mxu0 (%p666_p11), %v2440_v11 }
 0x937   : > { %2243 = vmatpush3.bf16.msra.mxu0 (%p666_p11), %v2242_v13 }
 0xa05   : >> { %v1736_v47 = vpop.f32.mrb[6].mxu0 }
 0xa06   : >> { %v1737_v48 = vadd.f32 %v2013_v46, %v1736_v47  ;;  %v2184_v49 = vpop.f32.mrb[7].mxu0 }
 0xa08   : >> { %v1740_v50 = vadd.f32 %v1737_v48, %v1556_v21 }
 0xa0a   : >> { %v1745_v51 = vsel %vm635_vm0, %v1740_v50, 0.0 }
 0xa0b   : >> { %1746 = vadd.xlane.f32.xlu0 %v1745_v51 }
 0xa98   : >> { %v1747_v52 = vpop.xlane.xlu0 %1746 }
 0xa99   : >> { %v1748_v53 = vmul.f32 0.03125, %v1747_v52 }
 0xa9b   : >> { %v1749_v54 = vsub.f32 %v1740_v50, %v1748_v53 }
 0xa9d   : >> { %v1750_v55 = vmul.f32 %v1749_v54, %v1749_v54 }
 0xa9f   : >> { %v1751_v56 = vsel %vm635_vm0, %v1750_v55, 0.0 }
 0xaa0   : >> { %1752 = vadd.xlane.f32.xlu0 %v1751_v56 }
 0xb2d   : >> { %v1753_v57 = vpop.xlane.xlu0 %1752 }
 0xb2e   : >> { %v1754_v58 = vmul.f32 0.03125, %v1753_v57 }
 0xb30   : >> { %v1755_v59 = vadd.f32 1e-05, %v1754_v58 }
 0xb32   : >> { %2339 = vrsqrt.f32 %v1755_v59 }
 0xb3c   : >> { %v2340_v60 = vpop.eup %2339 }
 0xb3d   : >> { %v1757_v62 = vmul.f32 %v2340_v60, %v1749_v54  ;;  %668 = sbr.rel (!%p666_p11) target bundleno = 348 (0x15c), region = 154 }
 0xb3f   : >> { %v1764_v63 = vmul.f32 %v2014_v61, %v1757_v62 }
 0xb41   : >> { %v1771_v0 = vadd.f32 %v2015_v22, %v1764_v63  }
 0xb43   : >> { %v2931_v20 = vmov %v1771_v0  ;;  %v1774_v1 = vsel (%p666_p11), %vm635_vm0, %v1771_v0, 0.0 }
 0xb44   : > { %1775 = vadd.xlane.f32.xlu0 %v1774_v1 }
 0xbd1   : > { %v1776_v2 = vpop.xlane.xlu0 %1775 }
 0xbd2   : > { %v1777_v20 = vmul.f32 0.03125, %v1776_v2 }
 0xbd4   : > { %v1778_v3 = vsub.f32 %v1771_v0, %v1777_v20 }
 0xbd6   : > { %v1779_v4 = vmul.f32 %v1778_v3, %v1778_v3 }
 0xbd8   : > { %v1780_v5 = vsel %vm635_vm0, %v1779_v4, 0.0 }
 0xbd9   : > { %1781 = vadd.xlane.f32.xlu0 %v1780_v5 }
 0xc66   : > { %v1782_v14 = vpop.xlane.xlu0 %1781 }
 0xc67   : > { %v1783_v15 = vmul.f32 0.03125, %v1782_v14 }
 0xc69   : > { %v1784_v16 = vadd.f32 1e-05, %v1783_v15 }
 0xc6b   : > { %2341 = vrsqrt.f32 %v1784_v16 }
 0xc75   : > { %v2342_v17 = vpop.eup %2341 }
 0xc76   : > { %v1786_v19 = vmul.f32 %v2342_v17, %v1778_v3 }
 0xc78   : > { %v1793_v24 = vmul.f32 %v2016_v18, %v1786_v19 }
 0xc7a   : > { %v1800_v25 = vadd.f32 %v2017_v23, %v1793_v24 }
 0xc7c   : > { %2194 = vmatmul.mubr.msk.f32.vlgmr.msra.gmra.mrb[0].mxu0 %vm635_vm0, %v1800_v25 }
 0xd4f   : > { %v1881_v27 = vpop.f32.mrb[0].mxu0 }
 0xd50   : > { %v1882_v28 = vadd.f32 %v2018_v26, %v1881_v27  ;;  %v2195_v29 = vpop.f32.mrb[1].mxu0 }
 0xd52   : > { %1885 = vst [vmem:[%s2933_s21] sm:$0xff] %v1882_v28 }
 0xd53   : > { %2356 = shalt.err (!%p2353_p4)
}
 0xd54   : > { %s2357_s23 = scalar_lea.hbm %s2841_s3, 128  ;;  %s2361_s21 = scalar_lea.hbm %s2907_s20, 256 }
 0xd55   : > { %p2358_p7 = scmp.ne.s32.totalorder %s2841_s3, %s2357_s23  ;;  %p2362_p10 = scmp.lt.u32.totalorder %s2841_s3, %s2907_s20 }
 0xd56   : > { %p2363_p11 = scmp.lt.u32.totalorder %s2361_s21, %s2357_s23  ;;  %p2365_p13 = scmp.lt.u32.totalorder %s2357_s23, %s2841_s3 }
 0xd57   : > { %p2359_p8 = pnand %p2358_p7, %p2587_p5 }
 0xd58   : > { %p2364_p12 = por %p2363_p11, %p2362_p10 }
 0xd59   : > { %p2360_p9 = pneg %p2359_p8 }
 0xd5a   : > { %p2366_p0 = por %p2365_p13, %p2364_p12 }
 0xd5c   : > { %p2367_p1 = pnand %p2366_p0, %p2360_p9 }
 0xd5e   : > { %2370 = shalt.err (!%p2367_p1)
}
 0xd5f   : > { %2244 = dma.vmem_to_hbm [thread:$0]  (%p2587_p5), %s2843_s1, 128, %s2841_s3, %s1887_s26  }
 0xd60 PF: > { %s2935_s2 = sld [smem:[#allocation5_spill]]  ;;  %p2250_p2 = scmp.ge.s32.totalorder %s2413_s24, 2 }
 0xd62   : > { %p2247_p3 = pnand %p2250_p2, %p2591_p6 }
 0xd66   : > { %s1912_s29 = sand.u32 1, %s2935_s2  }
 0xd67   : > { %s1913_s30 = scalar_lea.sflag [#allocation3], %s1912_s29 }
 0xd68   : > { %2396 = dma.done.wait (!%p2247_p3), %s1913_s30, 128  }
 0xd69   : > { %2398 = vsyncadd (!%p2247_p3), %s1913_s30, 4294967168  ;;  %s2937_s24 = sld [smem:[#allocation7_spill]]  ;;  %s2938_s23 = sld [smem:[#allocation6_spill]] }
 0xd6a   : > { %s2939_s27 = sld [smem:[#allocation8_spill]]  ;;  %s2940_s1 = smov %s2405_s22 }
 0xd6f   : > { %p30_p4 = scmp.ge.s32.totalorder %s2937_s24, 4   ;;  %s2941_s22 = smov %s2938_s23 }
 0xd70   : > { %s2942_s23 = smov %s2939_s27 }
 0xd71   :  { %32 = sbr.rel (!%p30_p4) target bundleno = 9 (0x9), region = 165 }
 0xd78   :  { %1918 = vsyncpa [#allocation3], 1 }
 0xd79   :  { %1920 = vsyncpa [#allocation3 + $0x1], 1 }

</bundles_post_ra>
